<compile_context>
chip_gen: v7x
topology: tpu7x:2x2x1
jax: 0.10.0
libtpu: 0.0.40
codegen_flags: <defaults>
</compile_context>

<pallas_src>
from functools import partial

import jax
import jax.numpy as jnp
from jax.experimental import pallas as pl
from jax.experimental.pallas import tpu as pltpu

KSIZE = 7
PAD = (KSIZE - 1) // 2
NPARAMS = 2 * KSIZE + 1  # 14 folded conv taps + 1 BN shift


# ---------------------------------------------------------------------------
# Shared in-kernel math
# ---------------------------------------------------------------------------
def _channel_sum(x2d):
    """Sum over channels (sublane axis) of a (C, HW) tile -> (1, HW) f32.

    f32 inputs: exact VPU sublane sum.  Sub-32-bit inputs (e.g. bf16): use
    the otherwise-idle MXU with f32 accumulation so no f32 copy of x is
    ever materialized (important on v5e, whose VPU has no bf16 path).
    """
    if x2d.dtype == jnp.float32:
        return jnp.sum(x2d, axis=0, keepdims=True)
    ones_row = jnp.ones((1, x2d.shape[0]), x2d.dtype)
    return jnp.dot(ones_row, x2d, preferred_element_type=jnp.float32)


def _gate_map(comp_flat, taps, H, W):
    """compress (1, H*W) f32 -> fused spatial gate (1, H*W) f32.

    dir-1 / dir-2 pooled stats, shared 1-D conv (k=7, pad=3, BN scale folded
    into `taps`, BN shift = taps[-1]) + sigmoid, and the outer product of the
    two gates flattened back to a single lane-dense (1, H*W) map.

    NOTE(perf): the flat lane-sliced form is kept on purpose; reshaping
    (1, H*W) -> (H, W) is a non-128-aligned relayout and these stats are tiny
    next to streaming x (feedback item acknowledged, traded for robustness).
    """
    rows = [comp_flat[:, h * W:(h + 1) * W] for h in range(H)]   # H x (1, W)

    # Direction 1 (reduce over H) -> lane-major (1, W).
    c1_max = rows[0]
    c1_sum = rows[0]
    for r in rows[1:]:
        c1_max = jnp.maximum(c1_max, r)
        c1_sum = c1_sum + r
    c1_mean = c1_sum * (1.0 / H)

    # Direction 2 (reduce over W) -> lane-major (1, H), so its conv also runs
    # along lanes (no sublane-strided shifts).
    c2_max = jnp.concatenate(
        [jnp.max(r, axis=1, keepdims=True) for r in rows], axis=1)   # (1, H)
    c2_sum = jnp.concatenate(
        [jnp.sum(r, axis=1, keepdims=True) for r in rows], axis=1)   # (1, H)
    c2_mean = c2_sum * (1.0 / W)

    def conv_bn_sigmoid(v_max, v_mean):
        # 1-D cross-correlation along lanes (2 in-channels, k=7, zero pad 3).
        L = v_max.shape[1]
        zpad = jnp.zeros((1, PAD), jnp.float32)
        pm = jnp.concatenate([zpad, v_max, zpad], axis=1)     # (1, L + 6)
        pa = jnp.concatenate([zpad, v_mean, zpad], axis=1)
        acc = jnp.zeros((1, L), jnp.float32)
        for k in range(KSIZE):
            acc = acc + pm[:, k:k + L] * taps[k] + pa[:, k:k + L] * taps[KSIZE + k]
        return jax.nn.sigmoid(acc + taps[2 * KSIZE])

    scale1 = conv_bn_sigmoid(c1_max, c1_mean)                 # (1, W)
    scale2 = conv_bn_sigmoid(c2_max, c2_mean)                 # (1, H)
    return jnp.concatenate(
        [scale1 * scale2[:, h:h + 1] for h in range(H)], axis=1)   # (1, H*W)


# ---------------------------------------------------------------------------
# Kernels
# ---------------------------------------------------------------------------
def _spatial_gate_kernel(p_ref, x_ref, o_ref, *, H, W, Bt, C):
    """Single-pass kernel: x_ref/o_ref are (Bt, C, H*W) VMEM blocks,
    p_ref is the (15,) f32 scalar-prefetch SMEM ref."""
    # Hoist the SMEM scalar reads out of the conv loops: read once per step.
    taps = [p_ref[i] for i in range(NPARAMS)]
    inv_c = 1.0 / C
    for i in range(Bt):                    # small static unroll (Bt <= 16)
        x2d = x_ref[i]                     # (C, H*W), kept in input dtype
        comp_flat = _channel_sum(x2d).astype(jnp.float32) * inv_c
        gate = _gate_map(comp_flat, taps, H, W)               # (1, H*W) f32
        # NOTE: gate is cast to the input dtype before the multiply (one
        # extra rounding for sub-f32 inputs vs an f32-promoting reference).
        o_ref[i] = x2d * gate.astype(x2d.dtype)


def _compress_gate_kernel(p_ref, x_ref, g_ref, acc_ref, *, H, W, C):
    """Two-phase fallback, pass 1: accumulate the channel sum across C tiles
    and emit the fused gate map on the last tile of each batch element."""
    c = pl.program_id(1)

    @pl.when(c == 0)
    def _():
        acc_ref[...] = jnp.zeros_like(acc_ref)

    acc_ref[...] += _channel_sum(x_ref[0]).astype(jnp.float32)

    @pl.when(c == pl.num_programs(1) - 1)
    def _():
        taps = [p_ref[i] for i in range(NPARAMS)]
        comp_flat = acc_ref[...] * (1.0 / C)
        g_ref[0] = _gate_map(comp_flat, taps, H, W)           # (1, H*W) f32


def _apply_gate_kernel(x_ref, g_ref, o_ref):
    """Two-phase fallback, pass 2: out = x * gate, per (1, Ct, H*W) tile."""
    x2d = x_ref[0]                                            # (Ct, H*W)
    o_ref[0] = x2d * g_ref[0].astype(x2d.dtype)


# ---------------------------------------------------------------------------
# Host-side heuristics
# ---------------------------------------------------------------------------
def _vmem_budget_bytes():
    """~3/4 of physical VMEM per TensorCore (headroom for compiler scratch):
    ~48 MiB on v7x (64 MiB physical), ~96 MiB on v5e/v6e (128 MiB)."""
    cap = 64 << 20                     # conservative default = v7x physical
    try:
        info = pltpu.get_tpu_info()
        for attr in ("vmem_capacity_bytes", "vmem_bytes", "vmem_size_bytes"):
            v = getattr(info, attr, None)
            if v:
                cap = int(v)
                break
    except Exception:
        pass
    return (cap * 3) // 4


def _pick_batch_tile(B, per_b_bytes, max_unroll=16):
    """Pack batch elements per grid step so each block reaches ~1-4 MiB while
    keeping >= min(8, B) grid steps (pipeline depth; 2-TC sharding on v7x)."""
    if per_b_bytes >= (1 << 20):
        return 1
    floor_steps = min(8, B)
    best = 1
    for bt in range(1, min(B, max_unroll) + 1):
        if B % bt:
            continue
        if B // bt < floor_steps:
            break
        if bt * per_b_bytes > (4 << 20):
            break
        best = bt
        if bt * per_b_bytes >= (1 << 20):
            break
    return best


def _pick_channel_tile(C, HW, itemsize, cap):
    """Largest C tile (multiple of 8 so the (Ct, HW) block stays (8,128)-legal,
    or full C) whose x block fits a fraction of the VMEM budget."""
    target = min(8 << 20, max(1 << 20, cap // 8))
    if C * HW * itemsize <= target:
        return C
    cands = [c for c in range(8, C, 8) if C % c == 0]
    fitting = [c for c in cands if c * HW * itemsize <= target]
    if fitting:
        return max(fitting)
    return min(cands) if cands else C


def _block_spec(shape, index_map, nbuf=2):
    """BlockSpec with optional deeper pipelining for tiny blocks."""
    if nbuf != 2:
        try:
            return pl.BlockSpec(shape, index_map, pipeline_mode=pl.Buffered(nbuf))
        except TypeError:              # BlockSpec without pipeline_mode kwarg
            pass
    return pl.BlockSpec(shape, index_map)


# ---------------------------------------------------------------------------
# Public wrapper
# ---------------------------------------------------------------------------
def spatial_gate(x, conv_w, gamma, beta, run_mean, run_var, eps=1e-5,
                 *, _force_path=None, _force_ct=None):
    """x: (B, C, H, W). conv_w: (1, 2, 7, 7) Conv2d weight (PyTorch OIHW)."""
    B, C, H, W = x.shape
    HW = H * W
    isz = x.dtype.itemsize
    # Free reshape for contiguous NCHW; lane-dense last dim.  If HW % 128 != 0
    # we accept trailing masked stores rather than zero-padding HW in HBM
    # (padding adds proportional HBM traffic to a memory-bound kernel).
    x3 = x.reshape(B, C, HW)

    # Fold eval-mode BatchNorm into the effective 1-D conv taps + one shift.
    s = (gamma / jnp.sqrt(run_var + eps)).astype(jnp.float32)             # (1,)
    t = (beta - run_mean * (gamma / jnp.sqrt(run_var + eps))).astype(jnp.float32)
    w_eff = conv_w[0, :, PAD, :].astype(jnp.float32) * s                  # (2, 7)
    params = jnp.concatenate([w_eff.reshape(-1), t]).astype(jnp.float32)  # (15,)

    cap = _vmem_budget_bytes()
    per_b = C * HW * isz
    temps = (2 << 20) + 16 * HW * 4          # f32 gate / stat temporaries

    use_tiled = (_force_path == "tiled") or (4 * per_b + temps > cap)

    if not use_tiled:
        # ---- single pass: one (Bt, C, HW) block per grid step --------------
        Bt = _pick_batch_tile(B, per_b)
        steps = B // Bt                      # (v7x: prefer >= 4 even steps/TC)
        block_bytes = Bt * per_b
        nbuf = 3 if (block_bytes <= (512 << 10) and steps >= 4) else 2
        vmem_limit = int(min(cap, max(2 * nbuf * block_bytes + temps, 16 << 20)))
        cost = pl.CostEstimate(flops=int(3 * B * C * HW),
                               transcendentals=int(B * (H + W)),
                               bytes_accessed=int(2 * B * C * HW * isz))
        out = pl.pallas_call(
            partial(_spatial_gate_kernel, H=H, W=W, Bt=Bt, C=C),
            out_shape=jax.ShapeDtypeStruct((B, C, HW), x.dtype),
            grid_spec=pltpu.PrefetchScalarGridSpec(
                num_scalar_prefetch=1,
                grid=(steps,),
                in_specs=[_block_spec((Bt, C, HW), lambda b, p: (b, 0, 0), nbuf)],
                out_specs=_block_spec((Bt, C, HW), lambda b, p: (b, 0, 0), nbuf),
            ),
            compiler_params=pltpu.CompilerParams(
                dimension_semantics=("parallel",),
                vmem_limit_bytes=vmem_limit,
            ),
            cost_estimate=cost,
        )(params, x3)
        return out.reshape(B, C, H, W)

    # ---- two-phase C-tiled fallback (very large C*HW; v7x's 64 MiB VMEM) ---
    Ct = _force_ct if _force_ct is not None else _pick_channel_tile(C, HW, isz, cap)
    Cn = C // Ct
    ct_bytes = Ct * HW * isz
    vmem_limit = int(min(cap, max(6 * ct_bytes + temps, 16 << 20)))

    # Pass 1: accumulate the channel sum per C tile; emit the fused gate map.
    gate = pl.pallas_call(
        partial(_compress_gate_kernel, H=H, W=W, C=C),
        out_shape=jax.ShapeDtypeStruct((B, 1, HW), jnp.float32),
        grid_spec=pltpu.PrefetchScalarGridSpec(
            num_scalar_prefetch=1,
            grid=(B, Cn),
            in_specs=[pl.BlockSpec((1, Ct, HW), lambda b, c, p: (b, c, 0))],
            out_specs=pl.BlockSpec((1, 1, HW), lambda b, c, p: (b, 0, 0)),
            scratch_shapes=[pltpu.VMEM((1, HW), jnp.float32)],
        ),
        compiler_params=pltpu.CompilerParams(
            dimension_semantics=("parallel", "arbitrary"),
            vmem_limit_bytes=vmem_limit,
        ),
        cost_estimate=pl.CostEstimate(
            flops=int(B * C * HW),
            transcendentals=int(B * (H + W)),
            bytes_accessed=int(B * C * HW * isz + B * HW * 4)),
    )(params, x3)

    # Pass 2: stream x again and apply the gate per C tile.
    out = pl.pallas_call(
        _apply_gate_kernel,
        out_shape=jax.ShapeDtypeStruct((B, C, HW), x.dtype),
        grid_spec=pltpu.PrefetchScalarGridSpec(
            num_scalar_prefetch=0,
            grid=(B, Cn),
            in_specs=[pl.BlockSpec((1, Ct, HW), lambda b, c: (b, c, 0)),
                      pl.BlockSpec((1, 1, HW), lambda b, c: (b, 0, 0))],
            out_specs=pl.BlockSpec((1, Ct, HW), lambda b, c: (b, c, 0)),
        ),
        compiler_params=pltpu.CompilerParams(
            dimension_semantics=("parallel", "parallel"),
            vmem_limit_bytes=vmem_limit,
        ),
        cost_estimate=pl.CostEstimate(
            flops=int(B * C * HW),
            transcendentals=0,
            bytes_accessed=int(2 * B * C * HW * isz + B * HW * 4)),
    )(x3, gate)
    return out.reshape(B, C, H, W)


# ---------------------------------------------------------------------------
# Pure-JAX reference (identical semantics, lax conv)
# ---------------------------------------------------------------------------
def spatial_gate_reference(x, conv_w, gamma, beta, run_mean, run_var, eps=1e-5):
    compress = jnp.mean(x, axis=1)                                        # (B, H, W)
    c1 = jnp.stack([jnp.max(compress, axis=1), jnp.mean(compress, axis=1)], axis=1)  # (B,2,W)
    c2 = jnp.stack([jnp.max(compress, axis=2), jnp.mean(compress, axis=2)], axis=1)  # (B,2,H)
    w1d = conv_w[:, :, PAD, :]                                            # (1, 2, 7)

    def conv1d(inp):
        return jax.lax.conv_general_dilated(
            inp, w1d, window_strides=(1,), padding=[(PAD, PAD)],
            dimension_numbers=("NCH", "OIH", "NCH"))                      # (B, 1, L)

    def bn(y):
        return (y - run_mean) / jnp.sqrt(run_var + eps) * gamma + beta

    s1 = jax.nn.sigmoid(bn(conv1d(c1)))[:, :, None, :]                    # (B,1,1,W)
    s2 = jax.nn.sigmoid(bn(conv1d(c2)))[:, :, :, None]                    # (B,1,H,1)
    return x * s1 * s2


if __name__ == "__main__":
    key = jax.random.PRNGKey(0)
    kx, kw, kg, kb = jax.random.split(key, 4)

    # Deterministic synthetic parameters (Conv2d(2,1,7,7,bias=False) + BatchNorm2d(1)).
    conv_w = 0.1 * jax.random.normal(kw, (1, 2, KSIZE, KSIZE), jnp.float32)
    gamma = 1.0 + 0.1 * jax.random.normal(kg, (1,), jnp.float32)
    beta = 0.05 * jax.random.normal(kb, (1,), jnp.float32)
    run_mean = jnp.zeros((1,), jnp.float32)
    run_var = jnp.ones((1,), jnp.float32)

    def check(x, rtol, atol, **kw):
        out = jax.block_until_ready(
            spatial_gate(x, conv_w, gamma, beta, run_mean, run_var, **kw))
        ref = spatial_gate_reference(
            x.astype(jnp.float32), conv_w, gamma, beta, run_mean, run_var)
        assert out.shape == x.shape and out.dtype == x.dtype
        assert jnp.allclose(out.astype(jnp.float32), ref, rtol=rtol, atol=atol), \
            "mismatch vs reference"

    # 1) basic f32 case (single-pass, Bt=1)
    x1 = jax.random.normal(kx, (2, 4, 16, 16), jnp.float32)
    check(x1, 1e-5, 1e-5)

    # 2) batch-packed path (Bt > 1) + Buffered(3) small-block pipelining
    x2 = jax.random.normal(kx, (32, 4, 8, 8), jnp.float32)
    check(x2, 1e-5, 1e-5)

    # 3) two-phase C-tiled fallback (forced at a small shape for coverage)
    x3 = jax.random.normal(kx, (2, 16, 8, 16), jnp.float32)
    check(x3, 1e-5, 1e-5, _force_path="tiled", _force_ct=8)

    # 4) sub-32-bit input exercises the MXU ones-row channel sum
    x4 = jax.random.normal(kx, (2, 4, 16, 16), jnp.float32).astype(jnp.bfloat16)
    check(x4, 2e-2, 2e-2)

    print("KERNEL_OK")
</pallas_src>

<mosaic_0001>
module attributes {stable_mosaic.version = 11 : i64} {
  func.func @_spatial_gate_kernel(%arg0: i32, %arg1: memref<15xf32, #tpu.memory_space<smem>>, %arg2: memref<1x4x256xf32, #tpu.memory_space<vmem>>, %arg3: memref<1x4x256xf32, #tpu.memory_space<vmem>>) attributes {dimension_semantics = [#tpu.dimension_semantics<parallel>], iteration_bounds = array<i64: 2>, scalar_prefetch = 1 : i64, scratch_operands = 0 : i64, tpu.core_type = #tpu.core_type<tc>, window_params = [{transform_indices = @transform_0, window_bounds = array<i64: 1, 4, 256>}, {transform_indices = @transform_1, window_bounds = array<i64: 1, 4, 256>}]} {
    %c0 = arith.constant 0 : index
    %0 = memref.load %arg1[%c0] : memref<15xf32, #tpu.memory_space<smem>>
    %c1 = arith.constant 1 : index
    %1 = memref.load %arg1[%c1] : memref<15xf32, #tpu.memory_space<smem>>
    %c2 = arith.constant 2 : index
    %2 = memref.load %arg1[%c2] : memref<15xf32, #tpu.memory_space<smem>>
    %c3 = arith.constant 3 : index
    %3 = memref.load %arg1[%c3] : memref<15xf32, #tpu.memory_space<smem>>
    %c4 = arith.constant 4 : index
    %4 = memref.load %arg1[%c4] : memref<15xf32, #tpu.memory_space<smem>>
    %c5 = arith.constant 5 : index
    %5 = memref.load %arg1[%c5] : memref<15xf32, #tpu.memory_space<smem>>
    %c6 = arith.constant 6 : index
    %6 = memref.load %arg1[%c6] : memref<15xf32, #tpu.memory_space<smem>>
    %c7 = arith.constant 7 : index
    %7 = memref.load %arg1[%c7] : memref<15xf32, #tpu.memory_space<smem>>
    %c8 = arith.constant 8 : index
    %8 = memref.load %arg1[%c8] : memref<15xf32, #tpu.memory_space<smem>>
    %c9 = arith.constant 9 : index
    %9 = memref.load %arg1[%c9] : memref<15xf32, #tpu.memory_space<smem>>
    %c10 = arith.constant 10 : index
    %10 = memref.load %arg1[%c10] : memref<15xf32, #tpu.memory_space<smem>>
    %c11 = arith.constant 11 : index
    %11 = memref.load %arg1[%c11] : memref<15xf32, #tpu.memory_space<smem>>
    %c12 = arith.constant 12 : index
    %12 = memref.load %arg1[%c12] : memref<15xf32, #tpu.memory_space<smem>>
    %c13 = arith.constant 13 : index
    %13 = memref.load %arg1[%c13] : memref<15xf32, #tpu.memory_space<smem>>
    %c14 = arith.constant 14 : index
    %14 = memref.load %arg1[%c14] : memref<15xf32, #tpu.memory_space<smem>>
    %c0_0 = arith.constant 0 : index
    %c0_1 = arith.constant 0 : index
    %c0_2 = arith.constant 0 : index
    %15 = vector.load %arg2[%c0_0, %c0_1, %c0_2] : memref<1x4x256xf32, #tpu.memory_space<vmem>>, vector<1x4x256xf32>
    %16 = vector.shape_cast %15 : vector<1x4x256xf32> to vector<4x256xf32>
    %cst = arith.constant dense<0.000000e+00> : vector<256xf32>
    %17 = vector.multi_reduction <add>, %16, %cst [0] : vector<4x256xf32> to vector<256xf32>
    %18 = vector.shape_cast %17 : vector<256xf32> to vector<1x256xf32>
    %cst_3 = arith.constant 2.500000e-01 : f32
    %19 = vector.broadcast %cst_3 : f32 to vector<1x256xf32>
    %20 = arith.mulf %18, %19 : vector<1x256xf32>
    %21 = vector.extract_strided_slice %20 {offsets = [0, 0], sizes = [1, 16], strides = [1, 1]} : vector<1x256xf32> to vector<1x16xf32>
    %22 = vector.extract_strided_slice %20 {offsets = [0, 16], sizes = [1, 16], strides = [1, 1]} : vector<1x256xf32> to vector<1x16xf32>
    %23 = vector.extract_strided_slice %20 {offsets = [0, 32], sizes = [1, 16], strides = [1, 1]} : vector<1x256xf32> to vector<1x16xf32>
    %24 = vector.extract_strided_slice %20 {offsets = [0, 48], sizes = [1, 16], strides = [1, 1]} : vector<1x256xf32> to vector<1x16xf32>
    %25 = vector.extract_strided_slice %20 {offsets = [0, 64], sizes = [1, 16], strides = [1, 1]} : vector<1x256xf32> to vector<1x16xf32>
    %26 = vector.extract_strided_slice %20 {offsets = [0, 80], sizes = [1, 16], strides = [1, 1]} : vector<1x256xf32> to vector<1x16xf32>
    %27 = vector.extract_strided_slice %20 {offsets = [0, 96], sizes = [1, 16], strides = [1, 1]} : vector<1x256xf32> to vector<1x16xf32>
    %28 = vector.extract_strided_slice %20 {offsets = [0, 112], sizes = [1, 16], strides = [1, 1]} : vector<1x256xf32> to vector<1x16xf32>
    %29 = vector.extract_strided_slice %20 {offsets = [0, 128], sizes = [1, 16], strides = [1, 1]} : vector<1x256xf32> to vector<1x16xf32>
    %30 = vector.extract_strided_slice %20 {offsets = [0, 144], sizes = [1, 16], strides = [1, 1]} : vector<1x256xf32> to vector<1x16xf32>
    %31 = vector.extract_strided_slice %20 {offsets = [0, 160], sizes = [1, 16], strides = [1, 1]} : vector<1x256xf32> to vector<1x16xf32>
    %32 = vector.extract_strided_slice %20 {offsets = [0, 176], sizes = [1, 16], strides = [1, 1]} : vector<1x256xf32> to vector<1x16xf32>
    %33 = vector.extract_strided_slice %20 {offsets = [0, 192], sizes = [1, 16], strides = [1, 1]} : vector<1x256xf32> to vector<1x16xf32>
    %34 = vector.extract_strided_slice %20 {offsets = [0, 208], sizes = [1, 16], strides = [1, 1]} : vector<1x256xf32> to vector<1x16xf32>
    %35 = vector.extract_strided_slice %20 {offsets = [0, 224], sizes = [1, 16], strides = [1, 1]} : vector<1x256xf32> to vector<1x16xf32>
    %36 = vector.extract_strided_slice %20 {offsets = [0, 240], sizes = [1, 16], strides = [1, 1]} : vector<1x256xf32> to vector<1x16xf32>
    %37 = arith.maximumf %21, %22 : vector<1x16xf32>
    %38 = arith.addf %21, %22 : vector<1x16xf32>
    %39 = arith.maximumf %37, %23 : vector<1x16xf32>
    %40 = arith.addf %38, %23 : vector<1x16xf32>
    %41 = arith.maximumf %39, %24 : vector<1x16xf32>
    %42 = arith.addf %40, %24 : vector<1x16xf32>
    %43 = arith.maximumf %41, %25 : vector<1x16xf32>
    %44 = arith.addf %42, %25 : vector<1x16xf32>
    %45 = arith.maximumf %43, %26 : vector<1x16xf32>
    %46 = arith.addf %44, %26 : vector<1x16xf32>
    %47 = arith.maximumf %45, %27 : vector<1x16xf32>
    %48 = arith.addf %46, %27 : vector<1x16xf32>
    %49 = arith.maximumf %47, %28 : vector<1x16xf32>
    %50 = arith.addf %48, %28 : vector<1x16xf32>
    %51 = arith.maximumf %49, %29 : vector<1x16xf32>
    %52 = arith.addf %50, %29 : vector<1x16xf32>
    %53 = arith.maximumf %51, %30 : vector<1x16xf32>
    %54 = arith.addf %52, %30 : vector<1x16xf32>
    %55 = arith.maximumf %53, %31 : vector<1x16xf32>
    %56 = arith.addf %54, %31 : vector<1x16xf32>
    %57 = arith.maximumf %55, %32 : vector<1x16xf32>
    %58 = arith.addf %56, %32 : vector<1x16xf32>
    %59 = arith.maximumf %57, %33 : vector<1x16xf32>
    %60 = arith.addf %58, %33 : vector<1x16xf32>
    %61 = arith.maximumf %59, %34 : vector<1x16xf32>
    %62 = arith.addf %60, %34 : vector<1x16xf32>
    %63 = arith.maximumf %61, %35 : vector<1x16xf32>
    %64 = arith.addf %62, %35 : vector<1x16xf32>
    %65 = arith.maximumf %63, %36 : vector<1x16xf32>
    %66 = arith.addf %64, %36 : vector<1x16xf32>
    %cst_4 = arith.constant 6.250000e-02 : f32
    %67 = vector.broadcast %cst_4 : f32 to vector<1x16xf32>
    %68 = arith.mulf %66, %67 : vector<1x16xf32>
    %cst_5 = arith.constant dense<0xFF800000> : vector<1xf32>
    %69 = vector.multi_reduction <maximumf>, %21, %cst_5 [1] : vector<1x16xf32> to vector<1xf32>
    %70 = vector.shape_cast %69 : vector<1xf32> to vector<1x1xf32>
    %cst_6 = arith.constant dense<0xFF800000> : vector<1xf32>
    %71 = vector.multi_reduction <maximumf>, %22, %cst_6 [1] : vector<1x16xf32> to vector<1xf32>
    %72 = vector.shape_cast %71 : vector<1xf32> to vector<1x1xf32>
    %cst_7 = arith.constant dense<0xFF800000> : vector<1xf32>
    %73 = vector.multi_reduction <maximumf>, %23, %cst_7 [1] : vector<1x16xf32> to vector<1xf32>
    %74 = vector.shape_cast %73 : vector<1xf32> to vector<1x1xf32>
    %cst_8 = arith.constant dense<0xFF800000> : vector<1xf32>
    %75 = vector.multi_reduction <maximumf>, %24, %cst_8 [1] : vector<1x16xf32> to vector<1xf32>
    %76 = vector.shape_cast %75 : vector<1xf32> to vector<1x1xf32>
    %cst_9 = arith.constant dense<0xFF800000> : vector<1xf32>
    %77 = vector.multi_reduction <maximumf>, %25, %cst_9 [1] : vector<1x16xf32> to vector<1xf32>
    %78 = vector.shape_cast %77 : vector<1xf32> to vector<1x1xf32>
    %cst_10 = arith.constant dense<0xFF800000> : vector<1xf32>
    %79 = vector.multi_reduction <maximumf>, %26, %cst_10 [1] : vector<1x16xf32> to vector<1xf32>
    %80 = vector.shape_cast %79 : vector<1xf32> to vector<1x1xf32>
    %cst_11 = arith.constant dense<0xFF800000> : vector<1xf32>
    %81 = vector.multi_reduction <maximumf>, %27, %cst_11 [1] : vector<1x16xf32> to vector<1xf32>
    %82 = vector.shape_cast %81 : vector<1xf32> to vector<1x1xf32>
    %cst_12 = arith.constant dense<0xFF800000> : vector<1xf32>
    %83 = vector.multi_reduction <maximumf>, %28, %cst_12 [1] : vector<1x16xf32> to vector<1xf32>
    %84 = vector.shape_cast %83 : vector<1xf32> to vector<1x1xf32>
    %cst_13 = arith.constant dense<0xFF800000> : vector<1xf32>
    %85 = vector.multi_reduction <maximumf>, %29, %cst_13 [1] : vector<1x16xf32> to vector<1xf32>
    %86 = vector.shape_cast %85 : vector<1xf32> to vector<1x1xf32>
    %cst_14 = arith.constant dense<0xFF800000> : vector<1xf32>
    %87 = vector.multi_reduction <maximumf>, %30, %cst_14 [1] : vector<1x16xf32> to vector<1xf32>
    %88 = vector.shape_cast %87 : vector<1xf32> to vector<1x1xf32>
    %cst_15 = arith.constant dense<0xFF800000> : vector<1xf32>
    %89 = vector.multi_reduction <maximumf>, %31, %cst_15 [1] : vector<1x16xf32> to vector<1xf32>
    %90 = vector.shape_cast %89 : vector<1xf32> to vector<1x1xf32>
    %cst_16 = arith.constant dense<0xFF800000> : vector<1xf32>
    %91 = vector.multi_reduction <maximumf>, %32, %cst_16 [1] : vector<1x16xf32> to vector<1xf32>
    %92 = vector.shape_cast %91 : vector<1xf32> to vector<1x1xf32>
    %cst_17 = arith.constant dense<0xFF800000> : vector<1xf32>
    %93 = vector.multi_reduction <maximumf>, %33, %cst_17 [1] : vector<1x16xf32> to vector<1xf32>
    %94 = vector.shape_cast %93 : vector<1xf32> to vector<1x1xf32>
    %cst_18 = arith.constant dense<0xFF800000> : vector<1xf32>
    %95 = vector.multi_reduction <maximumf>, %34, %cst_18 [1] : vector<1x16xf32> to vector<1xf32>
    %96 = vector.shape_cast %95 : vector<1xf32> to vector<1x1xf32>
    %cst_19 = arith.constant dense<0xFF800000> : vector<1xf32>
    %97 = vector.multi_reduction <maximumf>, %35, %cst_19 [1] : vector<1x16xf32> to vector<1xf32>
    %98 = vector.shape_cast %97 : vector<1xf32> to vector<1x1xf32>
    %cst_20 = arith.constant dense<0xFF800000> : vector<1xf32>
    %99 = vector.multi_reduction <maximumf>, %36, %cst_20 [1] : vector<1x16xf32> to vector<1xf32>
    %100 = vector.shape_cast %99 : vector<1xf32> to vector<1x1xf32>
    %101 = tpu.concatenate %70, %72, %74, %76, %78, %80, %82, %84, %86, %88, %90, %92, %94, %96, %98, %100 in 1 : vector<1x1xf32>, vector<1x1xf32>, vector<1x1xf32>, vector<1x1xf32>, vector<1x1xf32>, vector<1x1xf32>, vector<1x1xf32>, vector<1x1xf32>, vector<1x1xf32>, vector<1x1xf32>, vector<1x1xf32>, vector<1x1xf32>, vector<1x1xf32>, vector<1x1xf32>, vector<1x1xf32>, vector<1x1xf32> -> vector<1x16xf32>
    %cst_21 = arith.constant dense<0.000000e+00> : vector<1xf32>
    %102 = vector.multi_reduction <add>, %21, %cst_21 [1] : vector<1x16xf32> to vector<1xf32>
    %103 = vector.shape_cast %102 : vector<1xf32> to vector<1x1xf32>
    %cst_22 = arith.constant dense<0.000000e+00> : vector<1xf32>
    %104 = vector.multi_reduction <add>, %22, %cst_22 [1] : vector<1x16xf32> to vector<1xf32>
    %105 = vector.shape_cast %104 : vector<1xf32> to vector<1x1xf32>
    %cst_23 = arith.constant dense<0.000000e+00> : vector<1xf32>
    %106 = vector.multi_reduction <add>, %23, %cst_23 [1] : vector<1x16xf32> to vector<1xf32>
    %107 = vector.shape_cast %106 : vector<1xf32> to vector<1x1xf32>
    %cst_24 = arith.constant dense<0.000000e+00> : vector<1xf32>
    %108 = vector.multi_reduction <add>, %24, %cst_24 [1] : vector<1x16xf32> to vector<1xf32>
    %109 = vector.shape_cast %108 : vector<1xf32> to vector<1x1xf32>
    %cst_25 = arith.constant dense<0.000000e+00> : vector<1xf32>
    %110 = vector.multi_reduction <add>, %25, %cst_25 [1] : vector<1x16xf32> to vector<1xf32>
    %111 = vector.shape_cast %110 : vector<1xf32> to vector<1x1xf32>
    %cst_26 = arith.constant dense<0.000000e+00> : vector<1xf32>
    %112 = vector.multi_reduction <add>, %26, %cst_26 [1] : vector<1x16xf32> to vector<1xf32>
    %113 = vector.shape_cast %112 : vector<1xf32> to vector<1x1xf32>
    %cst_27 = arith.constant dense<0.000000e+00> : vector<1xf32>
    %114 = vector.multi_reduction <add>, %27, %cst_27 [1] : vector<1x16xf32> to vector<1xf32>
    %115 = vector.shape_cast %114 : vector<1xf32> to vector<1x1xf32>
    %cst_28 = arith.constant dense<0.000000e+00> : vector<1xf32>
    %116 = vector.multi_reduction <add>, %28, %cst_28 [1] : vector<1x16xf32> to vector<1xf32>
    %117 = vector.shape_cast %116 : vector<1xf32> to vector<1x1xf32>
    %cst_29 = arith.constant dense<0.000000e+00> : vector<1xf32>
    %118 = vector.multi_reduction <add>, %29, %cst_29 [1] : vector<1x16xf32> to vector<1xf32>
    %119 = vector.shape_cast %118 : vector<1xf32> to vector<1x1xf32>
    %cst_30 = arith.constant dense<0.000000e+00> : vector<1xf32>
    %120 = vector.multi_reduction <add>, %30, %cst_30 [1] : vector<1x16xf32> to vector<1xf32>
    %121 = vector.shape_cast %120 : vector<1xf32> to vector<1x1xf32>
    %cst_31 = arith.constant dense<0.000000e+00> : vector<1xf32>
    %122 = vector.multi_reduction <add>, %31, %cst_31 [1] : vector<1x16xf32> to vector<1xf32>
    %123 = vector.shape_cast %122 : vector<1xf32> to vector<1x1xf32>
    %cst_32 = arith.constant dense<0.000000e+00> : vector<1xf32>
    %124 = vector.multi_reduction <add>, %32, %cst_32 [1] : vector<1x16xf32> to vector<1xf32>
    %125 = vector.shape_cast %124 : vector<1xf32> to vector<1x1xf32>
    %cst_33 = arith.constant dense<0.000000e+00> : vector<1xf32>
    %126 = vector.multi_reduction <add>, %33, %cst_33 [1] : vector<1x16xf32> to vector<1xf32>
    %127 = vector.shape_cast %126 : vector<1xf32> to vector<1x1xf32>
    %cst_34 = arith.constant dense<0.000000e+00> : vector<1xf32>
    %128 = vector.multi_reduction <add>, %34, %cst_34 [1] : vector<1x16xf32> to vector<1xf32>
    %129 = vector.shape_cast %128 : vector<1xf32> to vector<1x1xf32>
    %cst_35 = arith.constant dense<0.000000e+00> : vector<1xf32>
    %130 = vector.multi_reduction <add>, %35, %cst_35 [1] : vector<1x16xf32> to vector<1xf32>
    %131 = vector.shape_cast %130 : vector<1xf32> to vector<1x1xf32>
    %cst_36 = arith.constant dense<0.000000e+00> : vector<1xf32>
    %132 = vector.multi_reduction <add>, %36, %cst_36 [1] : vector<1x16xf32> to vector<1xf32>
    %133 = vector.shape_cast %132 : vector<1xf32> to vector<1x1xf32>
    %134 = tpu.concatenate %103, %105, %107, %109, %111, %113, %115, %117, %119, %121, %123, %125, %127, %129, %131, %133 in 1 : vector<1x1xf32>, vector<1x1xf32>, vector<1x1xf32>, vector<1x1xf32>, vector<1x1xf32>, vector<1x1xf32>, vector<1x1xf32>, vector<1x1xf32>, vector<1x1xf32>, vector<1x1xf32>, vector<1x1xf32>, vector<1x1xf32>, vector<1x1xf32>, vector<1x1xf32>, vector<1x1xf32>, vector<1x1xf32> -> vector<1x16xf32>
    %cst_37 = arith.constant 6.250000e-02 : f32
    %135 = vector.broadcast %cst_37 : f32 to vector<1x16xf32>
    %136 = arith.mulf %134, %135 : vector<1x16xf32>
    %cst_38 = arith.constant 0.000000e+00 : f32
    %137 = vector.broadcast %cst_38 : f32 to vector<1x3xf32>
    %138 = tpu.concatenate %137, %65, %137 in 1 : vector<1x3xf32>, vector<1x16xf32>, vector<1x3xf32> -> vector<1x22xf32>
    %139 = tpu.concatenate %137, %68, %137 in 1 : vector<1x3xf32>, vector<1x16xf32>, vector<1x3xf32> -> vector<1x22xf32>
    %cst_39 = arith.constant 0.000000e+00 : f32
    %140 = vector.broadcast %cst_39 : f32 to vector<1x16xf32>
    %141 = vector.extract_strided_slice %138 {offsets = [0, 0], sizes = [1, 16], strides = [1, 1]} : vector<1x22xf32> to vector<1x16xf32>
    %142 = vector.broadcast %0 : f32 to vector<1x16xf32>
    %143 = arith.mulf %141, %142 : vector<1x16xf32>
    %144 = arith.addf %140, %143 : vector<1x16xf32>
    %145 = vector.extract_strided_slice %139 {offsets = [0, 0], sizes = [1, 16], strides = [1, 1]} : vector<1x22xf32> to vector<1x16xf32>
    %146 = vector.broadcast %7 : f32 to vector<1x16xf32>
    %147 = arith.mulf %145, %146 : vector<1x16xf32>
    %148 = arith.addf %144, %147 : vector<1x16xf32>
    %149 = vector.extract_strided_slice %138 {offsets = [0, 1], sizes = [1, 16], strides = [1, 1]} : vector<1x22xf32> to vector<1x16xf32>
    %150 = vector.broadcast %1 : f32 to vector<1x16xf32>
    %151 = arith.mulf %149, %150 : vector<1x16xf32>
    %152 = arith.addf %148, %151 : vector<1x16xf32>
    %153 = vector.extract_strided_slice %139 {offsets = [0, 1], sizes = [1, 16], strides = [1, 1]} : vector<1x22xf32> to vector<1x16xf32>
    %154 = vector.broadcast %8 : f32 to vector<1x16xf32>
    %155 = arith.mulf %153, %154 : vector<1x16xf32>
    %156 = arith.addf %152, %155 : vector<1x16xf32>
    %157 = vector.extract_strided_slice %138 {offsets = [0, 2], sizes = [1, 16], strides = [1, 1]} : vector<1x22xf32> to vector<1x16xf32>
    %158 = vector.broadcast %2 : f32 to vector<1x16xf32>
    %159 = arith.mulf %157, %158 : vector<1x16xf32>
    %160 = arith.addf %156, %159 : vector<1x16xf32>
    %161 = vector.extract_strided_slice %139 {offsets = [0, 2], sizes = [1, 16], strides = [1, 1]} : vector<1x22xf32> to vector<1x16xf32>
    %162 = vector.broadcast %9 : f32 to vector<1x16xf32>
    %163 = arith.mulf %161, %162 : vector<1x16xf32>
    %164 = arith.addf %160, %163 : vector<1x16xf32>
    %165 = vector.extract_strided_slice %138 {offsets = [0, 3], sizes = [1, 16], strides = [1, 1]} : vector<1x22xf32> to vector<1x16xf32>
    %166 = vector.broadcast %3 : f32 to vector<1x16xf32>
    %167 = arith.mulf %165, %166 : vector<1x16xf32>
    %168 = arith.addf %164, %167 : vector<1x16xf32>
    %169 = vector.extract_strided_slice %139 {offsets = [0, 3], sizes = [1, 16], strides = [1, 1]} : vector<1x22xf32> to vector<1x16xf32>
    %170 = vector.broadcast %10 : f32 to vector<1x16xf32>
    %171 = arith.mulf %169, %170 : vector<1x16xf32>
    %172 = arith.addf %168, %171 : vector<1x16xf32>
    %173 = vector.extract_strided_slice %138 {offsets = [0, 4], sizes = [1, 16], strides = [1, 1]} : vector<1x22xf32> to vector<1x16xf32>
    %174 = vector.broadcast %4 : f32 to vector<1x16xf32>
    %175 = arith.mulf %173, %174 : vector<1x16xf32>
    %176 = arith.addf %172, %175 : vector<1x16xf32>
    %177 = vector.extract_strided_slice %139 {offsets = [0, 4], sizes = [1, 16], strides = [1, 1]} : vector<1x22xf32> to vector<1x16xf32>
    %178 = vector.broadcast %11 : f32 to vector<1x16xf32>
    %179 = arith.mulf %177, %178 : vector<1x16xf32>
    %180 = arith.addf %176, %179 : vector<1x16xf32>
    %181 = vector.extract_strided_slice %138 {offsets = [0, 5], sizes = [1, 16], strides = [1, 1]} : vector<1x22xf32> to vector<1x16xf32>
    %182 = vector.broadcast %5 : f32 to vector<1x16xf32>
    %183 = arith.mulf %181, %182 : vector<1x16xf32>
    %184 = arith.addf %180, %183 : vector<1x16xf32>
    %185 = vector.extract_strided_slice %139 {offsets = [0, 5], sizes = [1, 16], strides = [1, 1]} : vector<1x22xf32> to vector<1x16xf32>
    %186 = vector.broadcast %12 : f32 to vector<1x16xf32>
    %187 = arith.mulf %185, %186 : vector<1x16xf32>
    %188 = arith.addf %184, %187 : vector<1x16xf32>
    %189 = vector.extract_strided_slice %138 {offsets = [0, 6], sizes = [1, 16], strides = [1, 1]} : vector<1x22xf32> to vector<1x16xf32>
    %190 = vector.broadcast %6 : f32 to vector<1x16xf32>
    %191 = arith.mulf %189, %190 : vector<1x16xf32>
    %192 = arith.addf %188, %191 : vector<1x16xf32>
    %193 = vector.extract_strided_slice %139 {offsets = [0, 6], sizes = [1, 16], strides = [1, 1]} : vector<1x22xf32> to vector<1x16xf32>
    %194 = vector.broadcast %13 : f32 to vector<1x16xf32>
    %195 = arith.mulf %193, %194 : vector<1x16xf32>
    %196 = arith.addf %192, %195 : vector<1x16xf32>
    %197 = vector.broadcast %14 : f32 to vector<1x16xf32>
    %198 = arith.addf %196, %197 : vector<1x16xf32>
    %199 = arith.negf %198 : vector<1x16xf32>
    %200 = math.exp %199 : vector<1x16xf32>
    %cst_40 = arith.constant 1.000000e+00 : f32
    %201 = vector.broadcast %cst_40 : f32 to vector<1x16xf32>
    %202 = arith.addf %201, %200 : vector<1x16xf32>
    %203 = arith.divf %201, %202 : vector<1x16xf32>
    %cst_41 = arith.constant 0.000000e+00 : f32
    %204 = vector.broadcast %cst_41 : f32 to vector<1x3xf32>
    %205 = tpu.concatenate %204, %101, %204 in 1 : vector<1x3xf32>, vector<1x16xf32>, vector<1x3xf32> -> vector<1x22xf32>
    %206 = tpu.concatenate %204, %136, %204 in 1 : vector<1x3xf32>, vector<1x16xf32>, vector<1x3xf32> -> vector<1x22xf32>
    %cst_42 = arith.constant 0.000000e+00 : f32
    %207 = vector.broadcast %cst_42 : f32 to vector<1x16xf32>
    %208 = vector.extract_strided_slice %205 {offsets = [0, 0], sizes = [1, 16], strides = [1, 1]} : vector<1x22xf32> to vector<1x16xf32>
    %209 = vector.broadcast %0 : f32 to vector<1x16xf32>
    %210 = arith.mulf %208, %209 : vector<1x16xf32>
    %211 = arith.addf %207, %210 : vector<1x16xf32>
    %212 = vector.extract_strided_slice %206 {offsets = [0, 0], sizes = [1, 16], strides = [1, 1]} : vector<1x22xf32> to vector<1x16xf32>
    %213 = vector.broadcast %7 : f32 to vector<1x16xf32>
    %214 = arith.mulf %212, %213 : vector<1x16xf32>
    %215 = arith.addf %211, %214 : vector<1x16xf32>
    %216 = vector.extract_strided_slice %205 {offsets = [0, 1], sizes = [1, 16], strides = [1, 1]} : vector<1x22xf32> to vector<1x16xf32>
    %217 = vector.broadcast %1 : f32 to vector<1x16xf32>
    %218 = arith.mulf %216, %217 : vector<1x16xf32>
    %219 = arith.addf %215, %218 : vector<1x16xf32>
    %220 = vector.extract_strided_slice %206 {offsets = [0, 1], sizes = [1, 16], strides = [1, 1]} : vector<1x22xf32> to vector<1x16xf32>
    %221 = vector.broadcast %8 : f32 to vector<1x16xf32>
    %222 = arith.mulf %220, %221 : vector<1x16xf32>
    %223 = arith.addf %219, %222 : vector<1x16xf32>
    %224 = vector.extract_strided_slice %205 {offsets = [0, 2], sizes = [1, 16], strides = [1, 1]} : vector<1x22xf32> to vector<1x16xf32>
    %225 = vector.broadcast %2 : f32 to vector<1x16xf32>
    %226 = arith.mulf %224, %225 : vector<1x16xf32>
    %227 = arith.addf %223, %226 : vector<1x16xf32>
    %228 = vector.extract_strided_slice %206 {offsets = [0, 2], sizes = [1, 16], strides = [1, 1]} : vector<1x22xf32> to vector<1x16xf32>
    %229 = vector.broadcast %9 : f32 to vector<1x16xf32>
    %230 = arith.mulf %228, %229 : vector<1x16xf32>
    %231 = arith.addf %227, %230 : vector<1x16xf32>
    %232 = vector.extract_strided_slice %205 {offsets = [0, 3], sizes = [1, 16], strides = [1, 1]} : vector<1x22xf32> to vector<1x16xf32>
    %233 = vector.broadcast %3 : f32 to vector<1x16xf32>
    %234 = arith.mulf %232, %233 : vector<1x16xf32>
    %235 = arith.addf %231, %234 : vector<1x16xf32>
    %236 = vector.extract_strided_slice %206 {offsets = [0, 3], sizes = [1, 16], strides = [1, 1]} : vector<1x22xf32> to vector<1x16xf32>
    %237 = vector.broadcast %10 : f32 to vector<1x16xf32>
    %238 = arith.mulf %236, %237 : vector<1x16xf32>
    %239 = arith.addf %235, %238 : vector<1x16xf32>
    %240 = vector.extract_strided_slice %205 {offsets = [0, 4], sizes = [1, 16], strides = [1, 1]} : vector<1x22xf32> to vector<1x16xf32>
    %241 = vector.broadcast %4 : f32 to vector<1x16xf32>
    %242 = arith.mulf %240, %241 : vector<1x16xf32>
    %243 = arith.addf %239, %242 : vector<1x16xf32>
    %244 = vector.extract_strided_slice %206 {offsets = [0, 4], sizes = [1, 16], strides = [1, 1]} : vector<1x22xf32> to vector<1x16xf32>
    %245 = vector.broadcast %11 : f32 to vector<1x16xf32>
    %246 = arith.mulf %244, %245 : vector<1x16xf32>
    %247 = arith.addf %243, %246 : vector<1x16xf32>
    %248 = vector.extract_strided_slice %205 {offsets = [0, 5], sizes = [1, 16], strides = [1, 1]} : vector<1x22xf32> to vector<1x16xf32>
    %249 = vector.broadcast %5 : f32 to vector<1x16xf32>
    %250 = arith.mulf %248, %249 : vector<1x16xf32>
    %251 = arith.addf %247, %250 : vector<1x16xf32>
    %252 = vector.extract_strided_slice %206 {offsets = [0, 5], sizes = [1, 16], strides = [1, 1]} : vector<1x22xf32> to vector<1x16xf32>
    %253 = vector.broadcast %12 : f32 to vector<1x16xf32>
    %254 = arith.mulf %252, %253 : vector<1x16xf32>
    %255 = arith.addf %251, %254 : vector<1x16xf32>
    %256 = vector.extract_strided_slice %205 {offsets = [0, 6], sizes = [1, 16], strides = [1, 1]} : vector<1x22xf32> to vector<1x16xf32>
    %257 = vector.broadcast %6 : f32 to vector<1x16xf32>
    %258 = arith.mulf %256, %257 : vector<1x16xf32>
    %259 = arith.addf %255, %258 : vector<1x16xf32>
    %260 = vector.extract_strided_slice %206 {offsets = [0, 6], sizes = [1, 16], strides = [1, 1]} : vector<1x22xf32> to vector<1x16xf32>
    %261 = vector.broadcast %13 : f32 to vector<1x16xf32>
    %262 = arith.mulf %260, %261 : vector<1x16xf32>
    %263 = arith.addf %259, %262 : vector<1x16xf32>
    %264 = vector.broadcast %14 : f32 to vector<1x16xf32>
    %265 = arith.addf %263, %264 : vector<1x16xf32>
    %266 = arith.negf %265 : vector<1x16xf32>
    %267 = math.exp %266 : vector<1x16xf32>
    %cst_43 = arith.constant 1.000000e+00 : f32
    %268 = vector.broadcast %cst_43 : f32 to vector<1x16xf32>
    %269 = arith.addf %268, %267 : vector<1x16xf32>
    %270 = arith.divf %268, %269 : vector<1x16xf32>
    %271 = vector.extract_strided_slice %270 {offsets = [0, 0], sizes = [1, 1], strides = [1, 1]} : vector<1x16xf32> to vector<1x1xf32>
    %272 = vector.broadcast %271 : vector<1x1xf32> to vector<1x16xf32>
    %273 = arith.mulf %203, %272 : vector<1x16xf32>
    %274 = vector.extract_strided_slice %270 {offsets = [0, 1], sizes = [1, 1], strides = [1, 1]} : vector<1x16xf32> to vector<1x1xf32>
    %275 = vector.broadcast %274 : vector<1x1xf32> to vector<1x16xf32>
    %276 = arith.mulf %203, %275 : vector<1x16xf32>
    %277 = vector.extract_strided_slice %270 {offsets = [0, 2], sizes = [1, 1], strides = [1, 1]} : vector<1x16xf32> to vector<1x1xf32>
    %278 = vector.broadcast %277 : vector<1x1xf32> to vector<1x16xf32>
    %279 = arith.mulf %203, %278 : vector<1x16xf32>
    %280 = vector.extract_strided_slice %270 {offsets = [0, 3], sizes = [1, 1], strides = [1, 1]} : vector<1x16xf32> to vector<1x1xf32>
    %281 = vector.broadcast %280 : vector<1x1xf32> to vector<1x16xf32>
    %282 = arith.mulf %203, %281 : vector<1x16xf32>
    %283 = vector.extract_strided_slice %270 {offsets = [0, 4], sizes = [1, 1], strides = [1, 1]} : vector<1x16xf32> to vector<1x1xf32>
    %284 = vector.broadcast %283 : vector<1x1xf32> to vector<1x16xf32>
    %285 = arith.mulf %203, %284 : vector<1x16xf32>
    %286 = vector.extract_strided_slice %270 {offsets = [0, 5], sizes = [1, 1], strides = [1, 1]} : vector<1x16xf32> to vector<1x1xf32>
    %287 = vector.broadcast %286 : vector<1x1xf32> to vector<1x16xf32>
    %288 = arith.mulf %203, %287 : vector<1x16xf32>
    %289 = vector.extract_strided_slice %270 {offsets = [0, 6], sizes = [1, 1], strides = [1, 1]} : vector<1x16xf32> to vector<1x1xf32>
    %290 = vector.broadcast %289 : vector<1x1xf32> to vector<1x16xf32>
    %291 = arith.mulf %203, %290 : vector<1x16xf32>
    %292 = vector.extract_strided_slice %270 {offsets = [0, 7], sizes = [1, 1], strides = [1, 1]} : vector<1x16xf32> to vector<1x1xf32>
    %293 = vector.broadcast %292 : vector<1x1xf32> to vector<1x16xf32>
    %294 = arith.mulf %203, %293 : vector<1x16xf32>
    %295 = vector.extract_strided_slice %270 {offsets = [0, 8], sizes = [1, 1], strides = [1, 1]} : vector<1x16xf32> to vector<1x1xf32>
    %296 = vector.broadcast %295 : vector<1x1xf32> to vector<1x16xf32>
    %297 = arith.mulf %203, %296 : vector<1x16xf32>
    %298 = vector.extract_strided_slice %270 {offsets = [0, 9], sizes = [1, 1], strides = [1, 1]} : vector<1x16xf32> to vector<1x1xf32>
    %299 = vector.broadcast %298 : vector<1x1xf32> to vector<1x16xf32>
    %300 = arith.mulf %203, %299 : vector<1x16xf32>
    %301 = vector.extract_strided_slice %270 {offsets = [0, 10], sizes = [1, 1], strides = [1, 1]} : vector<1x16xf32> to vector<1x1xf32>
    %302 = vector.broadcast %301 : vector<1x1xf32> to vector<1x16xf32>
    %303 = arith.mulf %203, %302 : vector<1x16xf32>
    %304 = vector.extract_strided_slice %270 {offsets = [0, 11], sizes = [1, 1], strides = [1, 1]} : vector<1x16xf32> to vector<1x1xf32>
    %305 = vector.broadcast %304 : vector<1x1xf32> to vector<1x16xf32>
    %306 = arith.mulf %203, %305 : vector<1x16xf32>
    %307 = vector.extract_strided_slice %270 {offsets = [0, 12], sizes = [1, 1], strides = [1, 1]} : vector<1x16xf32> to vector<1x1xf32>
    %308 = vector.broadcast %307 : vector<1x1xf32> to vector<1x16xf32>
    %309 = arith.mulf %203, %308 : vector<1x16xf32>
    %310 = vector.extract_strided_slice %270 {offsets = [0, 13], sizes = [1, 1], strides = [1, 1]} : vector<1x16xf32> to vector<1x1xf32>
    %311 = vector.broadcast %310 : vector<1x1xf32> to vector<1x16xf32>
    %312 = arith.mulf %203, %311 : vector<1x16xf32>
    %313 = vector.extract_strided_slice %270 {offsets = [0, 14], sizes = [1, 1], strides = [1, 1]} : vector<1x16xf32> to vector<1x1xf32>
    %314 = vector.broadcast %313 : vector<1x1xf32> to vector<1x16xf32>
    %315 = arith.mulf %203, %314 : vector<1x16xf32>
    %316 = vector.extract_strided_slice %270 {offsets = [0, 15], sizes = [1, 1], strides = [1, 1]} : vector<1x16xf32> to vector<1x1xf32>
    %317 = vector.broadcast %316 : vector<1x1xf32> to vector<1x16xf32>
    %318 = arith.mulf %203, %317 : vector<1x16xf32>
    %319 = tpu.concatenate %273, %276, %279, %282, %285, %288, %291, %294, %297, %300, %303, %306, %309, %312, %315, %318 in 1 : vector<1x16xf32>, vector<1x16xf32>, vector<1x16xf32>, vector<1x16xf32>, vector<1x16xf32>, vector<1x16xf32>, vector<1x16xf32>, vector<1x16xf32>, vector<1x16xf32>, vector<1x16xf32>, vector<1x16xf32>, vector<1x16xf32>, vector<1x16xf32>, vector<1x16xf32>, vector<1x16xf32>, vector<1x16xf32> -> vector<1x256xf32>
    %320 = vector.broadcast %319 : vector<1x256xf32> to vector<4x256xf32>
    %321 = arith.mulf %16, %320 : vector<4x256xf32>
    %c0_44 = arith.constant 0 : index
    %c0_45 = arith.constant 0 : index
    %c0_46 = arith.constant 0 : index
    %322 = vector.load %arg3[%c0_44, %c0_45, %c0_46] : memref<1x4x256xf32, #tpu.memory_space<vmem>>, vector<1x4x256xf32>
    %323 = vector.shape_cast %322 : vector<1x4x256xf32> to vector<4x256xf32>
    %324 = vector.shape_cast %321 : vector<4x256xf32> to vector<1x4x256xf32>
    tpu.vector_store %arg3[%c0_44, %c0_45, %c0_46], %324 {strides = array<i32>} : memref<1x4x256xf32, #tpu.memory_space<vmem>>, vector<1x4x256xf32>,
    return
  }
  func.func @transform_0(%arg0: i32, %arg1: memref<15xf32, #tpu.memory_space<smem>>) -> (i32, i32, i32) {
    %c0_i32 = arith.constant 0 : i32
    %c0_i32_0 = arith.constant 0 : i32
    %c0_i32_1 = arith.constant 0 : i32
    return %arg0, %c0_i32, %c0_i32_0 : i32, i32, i32
  }
  func.func @transform_1(%arg0: i32, %arg1: memref<15xf32, #tpu.memory_space<smem>>) -> (i32, i32, i32) {
    %c0_i32 = arith.constant 0 : i32
    %c0_i32_0 = arith.constant 0 : i32
    %c0_i32_1 = arith.constant 0 : i32
    return %arg0, %c0_i32, %c0_i32_0 : i32, i32, i32
  }
}

</mosaic_0001>

<bundles_post_ra>
// kernel: tpu_custom_call.1
= control target key start
LH: loop header
LB: loop body
LE: loop exit
PB: predicated region body
PF: predicated region fallthrough
CT: control target
= control target key end

     0   :  { %s1568_s0 = inlined_call_operand.hbm [shape: f32[15], index: 0, kind: input, shape index: {}]   ;;  %s1569_s1 = inlined_call_operand.hbm [shape: f32[2,4,256], index: 1, kind: input, shape index: {}]   ;;  %s1570_s2 = inlined_call_operand.hbm [shape: f32[2,4,256], index: 2, kind: output, shape index: {}]  }
   0x1   :  { %s997_s11 = scalar_lea.hbm %s1568_s0, 16 }
   0x2   :  { %p998_p0 = scmp.ne.s32.totalorder %s1568_s0, %s997_s11  ;;  %p1001_p1 = scmp.lt.u32.totalorder %s997_s11, %s1568_s0 }
   0x4   :  { %p1003_p2 = pnand %p1001_p1, %p998_p0 }
   0x6   :  { %1006 = shalt.err (!%p1003_p2)  }
   0x7   :  { %s1107_s16 = smov [#allocation3]  }
   0x8   :  { %8 = dma.hbm_to_smem %s1568_s0, 16, %s1107_s16, [#allocation2] }
   0x9   :  { %1081 = dma.done.wait [#allocation2], 16 }
   0xa   :  { %1082 = vsyncadd [#allocation2], 4294967280 }
   0xb   :  { %10 = sfence }
   0xc   :  { %11 = vsyncpa [#allocation5], 0 }
   0xd   :  { %13 = vsyncpa [#allocation5 + $0x1], 0 }
   0xe   :  { %14 = vsyncpa [#allocation6], 0 }
   0xf   :  { %16 = vsyncpa [#allocation6 + $0x1], 0  ;;  %s1167_s19 = smov 0   ;;  %s1169_s20 = smov 0  }
  0x10   :  { %s1171_s21 = smov 0   ;;  %s1173_s22 = smov 0  }
  0x11 LB: > { %s1188_s0 = sadd.s32 4294967295, %s1105_s22   ;;  %s861_s23 = sadd.s32 4294967294, %s1105_s22   ;;  %s1105_s22 = sphi %s1173_s22, %s1596_s22   ;;  %s1101_s21 = sphi %s1171_s21, %s1595_s21   ;;  %s1097_s20 = sphi %s1169_s20, %s1594_s20   ;;  %s1093_s19 = sphi %s1167_s19, %s1593_s19  }
  0x12   : > { %s1192_s24 = sadd.s32 1, %s1105_s22   ;;  %s29_s25 = sadd.s32 1, %s1101_s21 }
  0x13   : > { %s26_s26 = ssub.s32 %s1105_s22, %s1192_s24  ;;  %p36_p3 = scmp.ne.s32.totalorder %s1101_s21, %s1097_s20 }
  0x14   : > { %p27_p4 = scmp.eq.s32.totalorder %s26_s26, 0  ;;  %p37_p5 = scmp.eq.s32.totalorder %s1105_s22, 0 }
  0x15   : > { %p42_p6 = scmp.ne.s32.totalorder %s1097_s20, %s1093_s19  ;;  %p43_p7 = scmp.eq.s32.totalorder %s1188_s0, 0 }
  0x16   : > { %s1204_s27 = scalar_select %p27_p4, %s1101_s21, %s29_s25  }
  0x17   : > { %p1206_p8 = por %p37_p5, %p36_p3  ;;  %p1210_p9 = por %p43_p7, %p42_p6 }
  0x18   : > { %p66_p10 = scmp.eq.s32.totalorder %s1188_s0, 1  ;;  %p72_p11 = scmp.eq.s32.totalorder %s861_s23, 1 }
  0x19   : > { %p905_p13 = scmp.lt.s32.totalorder %s1105_s22, 2  ;;  %s92_s4 = sand.u32 1, %s1101_s21  }
  0x1a   : > { %p1217_p0 = por %p66_p10, %p36_p3  ;;  %p1221_p1 = por %p72_p11, %p42_p6 }
  0x1b   : > { %s891_s5 = sshll.u32 %s1105_s22, 7  ;;  %s864_s6 = sshll.u32 %s92_s4, 3 }
  0x1c   : > { %s1581_s30 = scalar_select %p1217_p0, 1, 0 }
  0x1d   : > { %s1582_s3 = scalar_select %p1221_p1, 1, 0 }
  0x1e   : > { %s1230_s9 = scalar_lea.hbm %s1569_s1, %s891_s5  ;;  %s96_s10 = scalar_lea.vmem [#allocation4], %s864_s6 }
  0x1f   : > { %s104_s11 = sshll.u32 %s96_s10, 4  ;;  %p1234_p2 = pnand %p905_p13, %p1206_p8  ;;  %s1238_s11 = int_to_ptr.vmem [resolvable:$true] %s104_s11 }
  0x20   : > { %s93_s13 = scalar_lea.sflag [#allocation5], %s92_s4  ;;  %s1007_s14 = scalar_lea.hbm %s1230_s9, 128 }
  0x21   : > { %p1008_p5 = scmp.ne.s32.totalorder %s1230_s9, %s1007_s14  ;;  %p1009_p6 = pneg %p1234_p2 }
  0x22   : > { %s1012_s17 = scalar_lea.hbm %s1569_s1, 256  ;;  %p1013_p8 = scmp.lt.u32.totalorder %s1230_s9, %s1569_s1 }
  0x23   : > { %p1010_p7 = pnand %p1009_p6, %p1008_p5  ;;  %p1014_p11 = scmp.lt.u32.totalorder %s1012_s17, %s1007_s14 }
  0x24   : > { %p1016_p12 = scmp.lt.u32.totalorder %s1007_s14, %s1230_s9 }
  0x25   : > { %p1011_p10 = pneg %p1010_p7  ;;  %p1015_p13 = por %p1014_p11, %p1013_p8 }
  0x27   : > { %p1017_p3 = por %p1016_p12, %p1015_p13 }
  0x29   : > { %p1018_p4 = pnand %p1017_p3, %p1011_p10 }
  0x2b   : > { %1021 = shalt.err (!%p1018_p4)
}
  0x2c   : > { %s1022_s25 = scalar_lea.vmem %s1238_s11, 128  ;;  %s1108_s26 = smov [#allocation4]  }
  0x2d   : > { %p1023_p5 = scmp.ne.s32.totalorder %s1238_s11, %s1022_s25  ;;  %s1027_s28 = sshll.u32 %s1108_s26, 4  ;;  %s1028_s28 = int_to_ptr.vmem [resolvable:$false] %s1027_s28 }
  0x2e   : > { %s1029_s4 = scalar_lea.vmem %s1028_s28, 256  ;;  %p1030_p0 = scmp.lt.s32.totalorder %s1238_s11, %s1028_s28 }
  0x2f   : > { %p1025_p7 = pnand %p1023_p5, %p1009_p6  ;;  %p1031_p8 = scmp.lt.s32.totalorder %s1029_s4, %s1022_s25 }
  0x31   : > { %p1026_p1 = pneg %p1025_p7  ;;  %p1032_p11 = por %p1031_p8, %p1030_p0 }
  0x33   : > { %p1033_p12 = pnand %p1032_p11, %p1026_p1 }
  0x35   : > { %1036 = shalt.err (!%p1033_p12)
}
  0x36   : > { %900 = dma.hbm_to_vmem [thread:$0]  (!%p1234_p2), %s1230_s9, 128, %s1238_s11, %s93_s13  }
  0x37   : > { %p1584_p3 = scmp.lt.s32.totalorder %s1105_s22, 3  ;;  %p1585_p4 = scmp.ge.s32.totalorder %s1105_s22, 1 }
  0x39   : > { %p110_p6 = pnand %p1585_p4, %p1584_p3 }
  0x3a   : > { %s1272_s5 = sand.u32 (!%p110_p6), 1, %s1097_s20  }
  0x3b   : > { %113 = sbr.rel (%p110_p6) target bundleno = 986 (0x3da), region = 24  ;;  %s1572_s6 = sshll.u32 (!%p110_p6), %s1272_s5, 3 }
  0x3c   : > { %s116_s7 = scalar_lea.sflag (!%p110_p6), [#allocation5], %s1272_s5  ;;  %s1278_s8 = scalar_lea.vmem (!%p110_p6), [#allocation4], %s1572_s6 }
  0x42   : > { %1084 = dma.done.wait (%p1210_p9), %s116_s7, 128  }
  0x43   : > { %1086 = vsyncadd (%p1210_p9), %s116_s7, 4294967168  ;;  %vm157_vm0 = vcmask 1043456   ;;  %v153_v0 = vld [vmem:[%s1278_s8] sm:$0xff]  ;;  %s1577_s29 = smov 80   ;;  %s1573_s9 = smov 112   ;;  %vm249_vm1 = vcmask 130048  }
  0x44   : > { %v158_v1 = vsel %vm157_vm0, %v153_v0, 0.0  ;;  %v155_v2 = vcombine.high %v153_v0, %v153_v0  ;;  %s1111_s10 = smov 64   ;;  %s1575_s11 = smov 96   ;;  %vm253_vm2 = vcmask 261248   ;;  %vm257_vm3 = vcmask 392448  }
  0x45   : > { %v159_v3 = vrot.slane %v158_v1, 4  ;;  %s1113_s12 = smov 32   ;;  %s1114_s13 = smov 48   ;;  %vm261_vm4 = vcmask 523648   ;;  %vm265_vm5 = vcmask 654848   ;;  %vm269_vm6 = vcmask 786048  }
  0x46   : > { %v165_v4 = vsel %vm157_vm0, %v155_v2, 0.0  ;;  %s1115_s14 = smov 16   ;;  %vm273_vm7 = vcmask 917248   ;;  %vm277_vm8 = vcmask 1048448   ;;  %vm305_vm9 = vcmask 7168   ;;  %s1116_s15 = smov 3  }
  0x47   : > { %v160_v5 = vadd.f32 %v159_v3, %v158_v1  ;;  %v166_v6 = vrot.slane %v165_v4, 4  ;;  %vm307_vm10 = vcmask 15360   ;;  %vm309_vm11 = vcmask 23552   ;;  %s1419_s16 = sld [smem:[#allocation3 + $0x3]]  ;;  %s1421_s17 = sld [smem:[#allocation3 + $0x1]] }
  0x48   : > { %vm311_vm12 = vcmask 31744   ;;  %vm313_vm13 = vcmask 39936   ;;  %vm315_vm14 = vcmask 48128   ;;  %vm317_vm15 = vcmask 56320   ;;  %s1423_s18 = sld [smem:[#allocation3 + $0x4]]  ;;  %s1425_s23 = sld [smem:[#allocation3 + $0x2]] }
  0x49   : > { %v161_v7 = vrot.slane %v160_v5, 2  ;;  %v167_v8 = vadd.f32 %v166_v6, %v165_v4  ;;  %vm319_vm0 = vcmask 64512   ;;  %s1429_s25 = sld [smem:[#allocation3 + $0x5]]  ;;  %s1437_s26 = sld [smem:[#allocation3 + $0x6]] }
  0x4a   : > { %s1117_s28 = smov 125   ;;  %s1118_s4 = smov 127  }
  0x4b   : > { %v162_v9 = vadd.f32 %v161_v7, %v160_v5  ;;  %v168_v10 = vrot.slane %v167_v8, 2  ;;  %s1119_s7 = smov 124   ;;  %s1449_s6 = sld [smem:[#allocation3 + $0x8]] }
  0x4c   : > { %p1590_p0 = scmp.ne.s32.totalorder %s1581_s30, 0 }
  0x4d   : > { %v163_v11 = vrot.slane %v162_v9, 1  ;;  %v169_v13 = vadd.f32 %v168_v10, %v167_v8 }
  0x4f   : > { %v164_v12 = vadd.f32 %v163_v11, %v162_v9  ;;  %v170_v15 = vrot.slane %v169_v13, 1 }
  0x51   : > { %v1285_v14 = vmul.f32 0.25, %v164_v12  ;;  %v171_v16 = vadd.f32 %v170_v15, %v169_v13 }
  0x53   : > { %185 = vrot.lane.b32.xlu1 %v1285_v14, %s1577_s29  ;;  %175 = vrot.lane.b32.xlu0 %v1285_v14, %s1573_s9  ;;  %v1299_v17 = vmul.f32 0.25, %v171_v16  ;;  %v250_v18 = vsel %vm249_vm1, %v1285_v14, -inf  ;;  %v335_v19 = vsel %vm249_vm1, %v1285_v14, 0.0  ;;  %v254_v20 = vsel %vm253_vm2, %v1285_v14, -inf }
  0x54   : > { %v258_v22 = vsel %vm257_vm3, %v1285_v14, -inf  ;;  %v262_v23 = vsel %vm261_vm4, %v1285_v14, -inf  ;;  %v266_v24 = vsel %vm265_vm5, %v1285_v14, -inf  ;;  %v270_v25 = vsel %vm269_vm6, %v1285_v14, -inf }
  0x55   : > { %v359_v21 = vsel %vm249_vm1, %v1299_v17, 0.0  ;;  %v274_v26 = vsel %vm273_vm7, %v1285_v14, -inf  ;;  %v278_v27 = vsel %vm277_vm8, %v1285_v14, -inf  ;;  %v281_v28 = vsel %vm249_vm1, %v1299_v17, -inf }
  0x56   : > { %v284_v29 = vsel %vm253_vm2, %v1299_v17, -inf  ;;  %v287_v30 = vsel %vm257_vm3, %v1299_v17, -inf  ;;  %v290_v31 = vsel %vm261_vm4, %v1299_v17, -inf  ;;  %v293_v32 = vsel %vm265_vm5, %v1299_v17, -inf }
  0x57   : > { %190 = vrot.lane.b32.xlu1 %v1285_v14, %s1111_s10  ;;  %180 = vrot.lane.b32.xlu0 %v1285_v14, %s1575_s11  ;;  %v296_v33 = vsel %vm269_vm6, %v1299_v17, -inf  ;;  %v299_v34 = vsel %vm273_vm7, %v1299_v17, -inf  ;;  %v302_v35 = vsel %vm277_vm8, %v1299_v17, -inf  ;;  %vm321_vm2 = vcmask 72704  }
  0x58   : > { %vm323_vm3 = vcmask 80896   ;;  %vm325_vm4 = vcmask 89088   ;;  %vm327_vm5 = vcmask 97280   ;;  %vm329_vm6 = vcmask 105472  }
  0x59   : > { %vm331_vm7 = vcmask 113664   ;;  %vm333_vm8 = vcmask 121856  }
  0x5b   : > { %200 = vrot.lane.b32.xlu1 %v1285_v14, %s1113_s12  ;;  %195 = vrot.lane.b32.xlu0 %v1285_v14, %s1114_s13 }
  0x5f   : > { %213 = vrot.lane.b32.xlu1 %v1299_v17, %s1573_s9  ;;  %205 = vrot.lane.b32.xlu0 %v1285_v14, %s1115_s14  ;;  %s1451_s9 = sld [smem:[#allocation3 + $0x7]] }
  0x63   : > { %223 = vrot.lane.b32.xlu1 %v1299_v17, %s1577_s29  ;;  %218 = vrot.lane.b32.xlu0 %v1299_v17, %s1575_s11  ;;  %s1453_s11 = sld [smem:[#allocation3 + $0x9]]  ;;  %s1462_s29 = sld [smem:[#allocation3 + $0xb]] }
  0x67   : > { %233 = vrot.lane.b32.xlu1 %v1299_v17, %s1114_s13  ;;  %228 = vrot.lane.b32.xlu0 %v1299_v17, %s1111_s10 }
  0x6b   : > { %243 = vrot.lane.b32.xlu1 %v1299_v17, %s1115_s14  ;;  %238 = vrot.lane.b32.xlu0 %v1299_v17, %s1113_s12 }
  0x8a   : > { %251 = vmax.xlane.f32.xlu0 %v250_v18 }
  0x8e   : > { %336 = vadd.xlane.f32.xlu0 %v335_v19 }
  0x8f   : > { %255 = vmax.xlane.f32.xlu1 %v254_v20 }
  0x92   : > { %360 = vadd.xlane.f32.xlu0 %v359_v21 }
  0x93   : > { %259 = vmax.xlane.f32.xlu1 %v258_v22 }
  0x97   : > { %263 = vmax.xlane.f32.xlu1 %v262_v23 }
  0x9b   : > { %267 = vmax.xlane.f32.xlu1 %v266_v24 }
  0x9f   : > { %271 = vmax.xlane.f32.xlu1 %v270_v25 }
  0xa3   : > { %275 = vmax.xlane.f32.xlu1 %v274_v26 }
  0xa7   : > { %279 = vmax.xlane.f32.xlu1 %v278_v27 }
  0xab   : > { %282 = vmax.xlane.f32.xlu1 %v281_v28 }
  0xaf   : > { %285 = vmax.xlane.f32.xlu1 %v284_v29 }
  0xb3   : > { %288 = vmax.xlane.f32.xlu1 %v287_v30 }
  0xb7   : > { %291 = vmax.xlane.f32.xlu1 %v290_v31 }
  0xbb   : > { %294 = vmax.xlane.f32.xlu1 %v293_v32 }
  0xbf   : > { %297 = vmax.xlane.f32.xlu1 %v296_v33 }
  0xc3   : > { %300 = vmax.xlane.f32.xlu1 %v299_v34 }
  0xc5   : > { %v176_v36 = vpop.permute.xlu0 %175  ;;  %v186_v37 = vpop.permute.xlu1 %185 }
  0xc6   : > { %v338_v38 = vsel %vm249_vm1, %v176_v36, 0.0  ;;  %v178_v39 = vmax.f32 %v1285_v14, %v176_v36  ;;  %v179_v40 = vadd.f32 %v176_v36, %v1285_v14  ;;  %v344_v48 = vsel %vm249_vm1, %v186_v37, 0.0 }
  0xc7   : > { %339 = vadd.xlane.f32.xlu0 %v338_v38  ;;  %303 = vmax.xlane.f32.xlu1 %v302_v35 }
  0xc9   : > { %v181_v41 = vpop.permute.xlu0 %180  ;;  %v191_v42 = vpop.permute.xlu1 %190 }
  0xca   : > { %v183_v43 = vmax.f32 %v178_v39, %v181_v41  ;;  %v184_v44 = vadd.f32 %v181_v41, %v179_v40  ;;  %v341_v45 = vsel %vm249_vm1, %v181_v41, 0.0  ;;  %v347_v55 = vsel %vm249_vm1, %v191_v42, 0.0 }
  0xcb   : > { %342 = vadd.xlane.f32.xlu0 %v341_v45 }
  0xcc   : > { %v188_v46 = vmax.f32 %v183_v43, %v186_v37  ;;  %v189_v47 = vadd.f32 %v186_v37, %v184_v44 }
  0xcd   : > { %v196_v49 = vpop.permute.xlu0 %195  ;;  %v201_v50 = vpop.permute.xlu1 %200 }
  0xce   : > { %v193_v51 = vmax.f32 %v188_v46, %v191_v42  ;;  %v194_v52 = vadd.f32 %v191_v42, %v189_v47  ;;  %v350_v62 = vsel %vm249_vm1, %v196_v49, 0.0  ;;  %v353_v5 = vsel %vm249_vm1, %v201_v50, 0.0 }
  0xcf   : > { %345 = vadd.xlane.f32.xlu0 %v344_v48 }
  0xd0   : > { %v198_v53 = vmax.f32 %v193_v51, %v196_v49  ;;  %v199_v54 = vadd.f32 %v196_v49, %v194_v52 }
  0xd1   : > { %v206_v56 = vpop.permute.xlu0 %205  ;;  %v214_v57 = vpop.permute.xlu1 %213 }
  0xd2   : > { %v203_v58 = vmax.f32 %v198_v53, %v201_v50  ;;  %v204_v59 = vadd.f32 %v201_v50, %v199_v54  ;;  %v356_v12 = vsel %vm249_vm1, %v206_v56, 0.0  ;;  %v362_v18 = vsel %vm249_vm1, %v214_v57, 0.0 }
  0xd3   : > { %348 = vadd.xlane.f32.xlu0 %v347_v55 }
  0xd4   : > { %v208_v60 = vmax.f32 %v203_v58, %v206_v56  ;;  %v209_v61 = vadd.f32 %v206_v56, %v204_v59 }
  0xd5   : > { %v219_v63 = vpop.permute.xlu0 %218  ;;  %v224_v0 = vpop.permute.xlu1 %223 }
  0xd6   : > { %v210_v1 = vmax.f32 %v208_v60, %v1299_v17  ;;  %v211_v2 = vadd.f32 %v209_v61, %v1299_v17  ;;  %v365_v24 = vsel %vm249_vm1, %v219_v63, 0.0  ;;  %v368_v25 = vsel %vm249_vm1, %v224_v0, 0.0 }
  0xd7   : > { %351 = vadd.xlane.f32.xlu0 %v350_v62 }
  0xd8   : > { %v216_v3 = vmax.f32 %v210_v1, %v214_v57  ;;  %v217_v4 = vadd.f32 %v214_v57, %v211_v2 }
  0xd9   : > { %v229_v6 = vpop.permute.xlu0 %228  ;;  %v234_v9 = vpop.permute.xlu1 %233 }
  0xda   : > { %v221_v7 = vmax.f32 %v216_v3, %v219_v63  ;;  %v222_v8 = vadd.f32 %v219_v63, %v217_v4  ;;  %v371_v26 = vsel %vm249_vm1, %v229_v6, 0.0  ;;  %v374_v27 = vsel %vm249_vm1, %v234_v9, 0.0 }
  0xdb   : > { %354 = vadd.xlane.f32.xlu0 %v353_v5 }
  0xdc   : > { %v226_v10 = vmax.f32 %v221_v7, %v224_v0  ;;  %v227_v11 = vadd.f32 %v224_v0, %v222_v8 }
  0xdd   : > { %v239_v15 = vpop.permute.xlu0 %238  ;;  %v1365_v19 = vpop.permute.xlu1 %243 }
  0xde   : > { %v231_v13 = vmax.f32 %v226_v10, %v229_v6  ;;  %v232_v14 = vadd.f32 %v229_v6, %v227_v11  ;;  %v377_v28 = vsel %vm249_vm1, %v239_v15, 0.0  ;;  %v380_v29 = vsel %vm249_vm1, %v1365_v19, 0.0 }
  0xdf   : > { %357 = vadd.xlane.f32.xlu0 %v356_v12 }
  0xe0   : > { %v236_v16 = vmax.f32 %v231_v13, %v234_v9  ;;  %v237_v17 = vadd.f32 %v234_v9, %v232_v14 }
  0xe2   : > { %v1367_v20 = vmax.f32 %v236_v16, %v239_v15  ;;  %v242_v21 = vadd.f32 %v239_v15, %v237_v17 }
  0xe3   : > { %363 = vadd.xlane.f32.xlu0 %v362_v18 }
  0xe4   : > { %v246_v22 = vmax.f32 %v1367_v20, %v1365_v19  ;;  %v1372_v23 = vadd.f32 %v1365_v19, %v242_v21  ;;  %v446_v20 = vstv %s1419_s16 }
  0xe7   : > { %366 = vadd.xlane.f32.xlu0 %v365_v24 }
  0xeb   : > { %369 = vadd.xlane.f32.xlu0 %v368_v25 }
  0xef   : > { %372 = vadd.xlane.f32.xlu0 %v371_v26 }
  0xf3   : > { %375 = vadd.xlane.f32.xlu0 %v374_v27 }
  0xf7   : > { %378 = vadd.xlane.f32.xlu0 %v377_v28 }
  0xfb   : > { %381 = vadd.xlane.f32.xlu0 %v380_v29 }
 0x117   : > { %v252_v34 = vpop.xlane.xlu0 %251 }
 0x11b   : > { %v337_v53 = vpop.xlane.xlu0 %336 }
 0x11c   : > { %v256_v30 = vpop.xlane.xlu1 %255 }
 0x11d   : > { %v306_v35 = vsel %vm305_vm9, %v252_v34, %v256_v30 }
 0x11f   : > { %v361_v57 = vpop.xlane.xlu0 %360 }
 0x120   : > { %v260_v31 = vpop.xlane.xlu1 %259 }
 0x121   : > { %v308_v37 = vsel %vm307_vm10, %v306_v35, %v260_v31 }
 0x124   : > { %v264_v32 = vpop.xlane.xlu1 %263 }
 0x125   : > { %v310_v39 = vsel %vm309_vm11, %v308_v37, %v264_v32  ;;  %v460_v37 = vstv %s1423_s18 }
 0x128   : > { %v268_v33 = vpop.xlane.xlu1 %267 }
 0x129   : > { %v312_v41 = vsel %vm311_vm12, %v310_v39, %v268_v33  ;;  %v248_v33 = vmul.f32 0.0625, %v1372_v23 }
 0x12c   : > { %v272_v36 = vpop.xlane.xlu1 %271 }
 0x12d   : > { %v314_v42 = vsel %vm313_vm13, %v312_v41, %v272_v36  ;;  %v474_v41 = vstv %s1429_s25  ;;  %s138_s25 = sld [smem:[#allocation3]] }
 0x130   : > { %v276_v38 = vpop.xlane.xlu1 %275 }
 0x131   : > { %v316_v44 = vsel %vm315_vm14, %v314_v42, %v276_v38  ;;  %v432_v38 = vstv %s1425_s23  ;;  %s1122_s23 = smov 122  }
 0x134   : > { %v280_v40 = vpop.xlane.xlu1 %279 }
 0x135   : > { %v318_v46 = vsel %vm317_vm15, %v316_v44, %v280_v40 }
 0x138   : > { %v283_v43 = vpop.xlane.xlu1 %282 }
 0x139   : > { %v320_v48 = vsel %vm319_vm0, %v318_v46, %v283_v43  ;;  %v488_v43 = vstv %s1437_s26  ;;  %v425_v46 = vstv %s1449_s6  ;;  %s1456_s26 = sld [smem:[#allocation3 + $0xa]]  ;;  %s1468_s6 = sld [smem:[#allocation3 + $0xc]] }
 0x13c   : > { %v286_v45 = vpop.xlane.xlu1 %285 }
 0x13d   : > { %v322_v49 = vsel %vm321_vm2, %v320_v48, %v286_v45  ;;  %v415_v48 = vstv %s1451_s9  ;;  %s1475_s9 = sld [smem:[#allocation3 + $0xd]] }
 0x140   : > { %v289_v47 = vpop.xlane.xlu1 %288 }
 0x141   : > { %v324_v51 = vsel %vm323_vm3, %v322_v49, %v289_v47  ;;  %v412_v49 = vstv %s138_s25 }
 0x144   : > { %v292_v50 = vpop.xlane.xlu1 %291 }
 0x145   : > { %v326_v54 = vsel %vm325_vm4, %v324_v51, %v292_v50 }
 0x148   : > { %v295_v52 = vpop.xlane.xlu1 %294 }
 0x149   : > { %v328_v55 = vsel %vm327_vm5, %v326_v54, %v295_v52 }
 0x14c   : > { %v298_v56 = vpop.xlane.xlu1 %297 }
 0x14d   : > { %v330_v58 = vsel %vm329_vm6, %v328_v55, %v298_v56 }
 0x150   : > { %v301_v59 = vpop.xlane.xlu1 %300 }
 0x151   : > { %v332_v60 = vsel %vm331_vm7, %v330_v58, %v301_v59 }
 0x154   : > { %v340_v61 = vpop.xlane.xlu0 %339  ;;  %v304_v62 = vpop.xlane.xlu1 %303 }
 0x155   : > { %v334_v63 = vsel %vm333_vm8, %v332_v60, %v304_v62  ;;  %v383_v9 = vsel %vm305_vm9, %v337_v53, %v340_v61  ;;  %vm404_vm9 = vcmask 154624   ;;  %v439_v53 = vstv %s1453_s11  ;;  %s1586_s11 = smov 80  }
 0x156   : > { %511 = vrot.lane.b32.xlu1 %v334_v63, %s1116_s15  ;;  %v453_v62 = vstv %s1456_s26 }
 0x158   : > { %v343_v0 = vpop.xlane.xlu0 %342 }
 0x159   : > { %v384_v10 = vsel %vm307_vm10, %v383_v9, %v343_v0  ;;  %v481_v9 = vstv %s1468_s6  ;;  %vm743_vm10 = vcmask 261120  }
 0x15c   : > { %v346_v1 = vpop.xlane.xlu0 %345 }
 0x15d   : > { %v385_v11 = vsel %vm309_vm11, %v384_v10, %v346_v1 }
 0x160   : > { %v349_v2 = vpop.xlane.xlu0 %348 }
 0x161   : > { %v386_v12 = vsel %vm311_vm12, %v385_v11, %v349_v2  ;;  %vm747_vm12 = vcmask 523264  }
 0x164   : > { %v352_v3 = vpop.xlane.xlu0 %351 }
 0x165   : > { %v387_v14 = vsel %vm313_vm13, %v386_v12, %v352_v3  ;;  %v495_v12 = vstv %s1475_s9  ;;  %vm749_vm13 = vcmask 654336  }
 0x168   : > { %v355_v4 = vpop.xlane.xlu0 %354 }
 0x169   : > { %v388_v15 = vsel %vm315_vm14, %v387_v14, %v355_v4  ;;  %v467_v4 = vstv %s1462_s29  ;;  %s1498_s29 = sld [smem:[#allocation3 + $0xe]]  ;;  %vm751_vm14 = vcmask 785408  }
 0x16c   : > { %v358_v5 = vpop.xlane.xlu0 %357 }
 0x16d   : > { %v389_v16 = vsel %vm317_vm15, %v388_v15, %v358_v5  ;;  %vm753_vm15 = vcmask 916480  }
 0x16e   : > { %v390_v18 = vsel %vm319_vm0, %v389_v16, %v361_v57 }
 0x170   : > { %v364_v6 = vpop.xlane.xlu0 %363 }
 0x171   : > { %v391_v21 = vsel %vm321_vm2, %v390_v18, %v364_v6 }
 0x174   : > { %v367_v7 = vpop.xlane.xlu0 %366 }
 0x175   : > { %v392_v24 = vsel %vm323_vm3, %v391_v21, %v367_v7 }
 0x178   : > { %v370_v8 = vpop.xlane.xlu0 %369 }
 0x179   : > { %v393_v26 = vsel %vm325_vm4, %v392_v24, %v370_v8  ;;  %v1123_v24 = vmov 9  }
 0x17a   : > { %971 = vset.pattern.permute.xlu1 %v1123_v24  ;;  %v1130_v24 = vmov 13  }
 0x17c   : > { %v373_v13 = vpop.xlane.xlu0 %372 }
 0x17d   : > { %v394_v27 = vsel %vm327_vm5, %v393_v26, %v373_v13 }
 0x180   : > { %v376_v17 = vpop.xlane.xlu0 %375 }
 0x181   : > { %v395_v28 = vsel %vm329_vm6, %v394_v27, %v376_v17 }
 0x184   : > { %v379_v25 = vpop.xlane.xlu0 %378 }
 0x185   : > { %v396_v29 = vsel %vm331_vm7, %v395_v28, %v379_v25  ;;  %v1124_v25 = vmov 1  }
 0x186   : > { %970 = vset.pattern.permute.xlu0 %v1124_v25  ;;  %v1131_v25 = vmov 12  }
 0x188   : > { %v382_v30 = vpop.xlane.xlu0 %381 }
 0x189   : > { %v397_v31 = vsel %vm333_vm8, %v396_v29, %v382_v30 }
 0x18a   : > { %v398_v32 = vmul.f32 0.0625, %v397_v31 }
 0x18c   : > { %517 = vrot.lane.b32.xlu0 %v398_v32, %s1116_s15 }
 0x190   : > { %400 = vrot.lane.b32.xlu0 %v246_v22, %s1116_s15  ;;  %v418_v22 = vstv %s1421_s17  ;;  %s1121_s17 = smov 123  }
 0x194   : > { %407 = vrot.lane.b32.xlu0 %v248_v33, %s1116_s15  ;;  %s1120_s15 = smov 126  }
 0x1c8   : > { %v512_v19 = vpop.permute.xlu1 %511 }
 0x1c9   : > { %v514_v23 = vsel %vm309_vm11, 0.0, %v512_v19 }
 0x1ca   : > { %v515_v34 = vsel %vm404_vm9, %v514_v23, 0.0 }
 0x1cb   : > { %v550_v35 = vmul.f32 %v515_v34, %v446_v20  ;;  %v526_v36 = vmul.f32 %v515_v34, %v418_v22  ;;  %v562_v39 = vmul.f32 %v515_v34, %v460_v37  ;;  %v538_v40 = vmul.f32 %v515_v34, %v432_v38 }
 0x1cc   : > { %v574_v42 = vmul.f32 %v515_v34, %v474_v41  ;;  %v586_v44 = vmul.f32 %v515_v34, %v488_v43  ;;  %v522_v55 = vmul.f32 %v515_v34, %v412_v49 }
 0x1cd   : > { %552 = vrot.lane.b32.xlu0 %v550_v35, %s1117_s28  ;;  %528 = vrot.lane.b32.xlu1 %v526_v36, %s1118_s4 }
 0x1d1   : > { %564 = vrot.lane.b32.xlu0 %v562_v39, %s1119_s7  ;;  %540 = vrot.lane.b32.xlu1 %v538_v40, %s1120_s15 }
 0x1d5   : > { %576 = vrot.lane.b32.xlu0 %v574_v42, %s1121_s17 }
 0x1d9   : > { %588 = vrot.lane.b32.xlu0 %v586_v44, %s1122_s23 }
 0x1fe   : > { %v518_v45 = vpop.permute.xlu0 %517 }
 0x1ff   : > { %v520_v47 = vsel %vm309_vm11, 0.0, %v518_v45 }
 0x200   : > { %v521_v50 = vsel %vm404_vm9, %v520_v47, 0.0 }
 0x201   : > { %v532_v51 = vmul.f32 %v521_v50, %v425_v46  ;;  %v524_v54 = vmul.f32 %v521_v50, %v415_v48  ;;  %v544_v59 = vmul.f32 %v521_v50, %v439_v53  ;;  %v556_v2 = vmul.f32 %v521_v50, %v453_v62 }
 0x202   : > { %v401_v52 = vpop.permute.xlu0 %400  ;;  %v568_v7 = vmul.f32 %v521_v50, %v467_v4  ;;  %v580_v10 = vmul.f32 %v521_v50, %v481_v9  ;;  %v592_v13 = vmul.f32 %v521_v50, %v495_v12 }
 0x203   : > { %v403_v56 = vsel %vm309_vm11, 0.0, %v401_v52  ;;  %534 = vrot.lane.b32.xlu1 %v532_v51, %s1118_s4  ;;  %v525_v58 = vadd.f32 %v524_v54, %v522_v55 }
 0x204   : > { %v405_v57 = vsel %vm404_vm9, %v403_v56, 0.0 }
 0x205   : > { %v419_v60 = vmul.f32 %v418_v22, %v405_v57  ;;  %v413_v63 = vmul.f32 %v412_v49, %v405_v57  ;;  %v433_v3 = vmul.f32 %v432_v38, %v405_v57  ;;  %v447_v8 = vmul.f32 %v446_v20, %v405_v57 }
 0x206   : > { %v408_v61 = vpop.permute.xlu0 %407  ;;  %v461_v11 = vmul.f32 %v460_v37, %v405_v57  ;;  %v475_v14 = vmul.f32 %v474_v41, %v405_v57  ;;  %v489_v16 = vmul.f32 %v488_v43, %v405_v57 }
 0x207   : > { %v410_v0 = vsel %vm309_vm11, 0.0, %v408_v61  ;;  %546 = vrot.lane.b32.xlu1 %v544_v59, %s1120_s15  ;;  %421 = vrot.lane.b32.xlu0 %v419_v60, %s1118_s4  ;;  %vm745_vm11 = vcmask 392192  }
 0x208   : > { %v411_v1 = vsel %vm404_vm9, %v410_v0, 0.0 }
 0x209   : > { %v416_v5 = vmul.f32 %v415_v48, %v411_v1  ;;  %v426_v15 = vmul.f32 %v425_v46, %v411_v1  ;;  %v440_v17 = vmul.f32 %v439_v53, %v411_v1  ;;  %v454_v18 = vmul.f32 %v453_v62, %v411_v1 }
 0x20a   : > { %v468_v21 = vmul.f32 %v467_v4, %v411_v1  ;;  %v482_v26 = vmul.f32 %v481_v9, %v411_v1  ;;  %v496_v27 = vmul.f32 %v495_v12, %v411_v1  ;;  %v502_v48 = vstv %s1498_s29 }
 0x20b   : > { %558 = vrot.lane.b32.xlu1 %v556_v2, %s1117_s28  ;;  %435 = vrot.lane.b32.xlu0 %v433_v3, %s1120_s15  ;;  %v417_v6 = vadd.f32 %v416_v5, %v413_v63 }
 0x20f   : > { %570 = vrot.lane.b32.xlu1 %v568_v7, %s1119_s7  ;;  %449 = vrot.lane.b32.xlu0 %v447_v8, %s1117_s28 }
 0x213   : > { %582 = vrot.lane.b32.xlu1 %v580_v10, %s1121_s17  ;;  %463 = vrot.lane.b32.xlu0 %v461_v11, %s1119_s7 }
 0x217   : > { %594 = vrot.lane.b32.xlu1 %v592_v13, %s1122_s23  ;;  %477 = vrot.lane.b32.xlu0 %v475_v14, %s1121_s17 }
 0x21b   : > { %428 = vrot.lane.b32.xlu1 %v426_v15, %s1118_s4  ;;  %491 = vrot.lane.b32.xlu0 %v489_v16, %s1122_s23  ;;  %v1125_v15 = vmov 2   ;;  %v1126_v16 = vmov 10  }
 0x21f   : > { %442 = vrot.lane.b32.xlu1 %v440_v17, %s1120_s15  ;;  %v1127_v17 = vmov 3   ;;  %s777_s15 = scalar_lea.sflag [#allocation6], %s1272_s5 }
 0x223   : > { %456 = vrot.lane.b32.xlu1 %v454_v18, %s1117_s28  ;;  %v1128_v18 = vmov 4  }
 0x227   : > { %470 = vrot.lane.b32.xlu1 %v468_v21, %s1119_s7  ;;  %v1129_v21 = vmov 11  }
 0x22b   : > { %484 = vrot.lane.b32.xlu1 %v482_v26, %s1121_s17  ;;  %v1132_v26 = vmov 7  }
 0x22f   : > { %498 = vrot.lane.b32.xlu1 %v496_v27, %s1122_s23  ;;  %v1133_v27 = vmov 5  }
 0x23f   : > { %v553_v28 = vpop.permute.xlu0 %552  ;;  %v529_v29 = vpop.permute.xlu1 %528 }
 0x240   : > { %v531_v32 = vadd.f32 %v529_v29, %v525_v58  ;;  %v1135_v29 = vmov 6  }
 0x243   : > { %v565_v30 = vpop.permute.xlu0 %564  ;;  %v541_v31 = vpop.permute.xlu1 %540 }
 0x247   : > { %v577_v20 = vpop.permute.xlu0 %576 }
 0x24b   : > { %v589_v36 = vpop.permute.xlu0 %588 }
 0x275   : > { %v535_v33 = vpop.permute.xlu1 %534 }
 0x276   : > { %v537_v19 = vadd.f32 %v535_v33, %v531_v32  ;;  %v1138_v32 = vmov 0  }
 0x278   : > { %v543_v22 = vadd.f32 %v541_v31, %v537_v19  ;;  %v1137_v31 = vmov 14  }
 0x279   : > { %v547_v23 = vpop.permute.xlu1 %546  ;;  %v422_v40 = vpop.permute.xlu0 %421 }
 0x27a   : > { %v549_v34 = vadd.f32 %v547_v23, %v543_v22  ;;  %v424_v51 = vadd.f32 %v422_v40, %v417_v6 }
 0x27c   : > { %v555_v35 = vadd.f32 %v553_v28, %v549_v34  ;;  %v1134_v28 = vmov 8  }
 0x27d   : > { %v559_v37 = vpop.permute.xlu1 %558  ;;  %v436_v46 = vpop.permute.xlu0 %435 }
 0x27e   : > { %v561_v38 = vadd.f32 %v559_v37, %v555_v35 }
 0x280   : > { %v567_v39 = vadd.f32 %v565_v30, %v561_v38  ;;  %v1136_v30 = vmov 15  }
 0x281   : > { %v571_v41 = vpop.permute.xlu1 %570  ;;  %v450_v53 = vpop.permute.xlu0 %449 }
 0x282   : > { %v573_v42 = vadd.f32 %v571_v41, %v567_v39 }
 0x284   : > { %v579_v43 = vadd.f32 %v577_v20, %v573_v42 }
 0x285   : > { %v583_v44 = vpop.permute.xlu1 %582  ;;  %v464_v60 = vpop.permute.xlu0 %463 }
 0x286   : > { %v585_v45 = vadd.f32 %v583_v44, %v579_v43 }
 0x288   : > { %v591_v47 = vadd.f32 %v589_v36, %v585_v45 }
 0x289   : > { %v595_v49 = vpop.permute.xlu1 %594  ;;  %v478_v1 = vpop.permute.xlu0 %477 }
 0x28a   : > { %v597_v50 = vadd.f32 %v595_v49, %v591_v47 }
 0x28c   : > { %v598_v52 = vadd.f32 %v597_v50, %v502_v48 }
 0x28d   : > { %v429_v54 = vpop.permute.xlu1 %428  ;;  %v492_v9 = vpop.permute.xlu0 %491 }
 0x28e   : > { %v885_v55 = vmul.f32 -1.442695, %v598_v52  ;;  %v431_v56 = vadd.f32 %v429_v54, %v424_v51 }
 0x290   : > { %988 = vpow2.f32 %v885_v55  ;;  %v438_v57 = vadd.f32 %v436_v46, %v431_v56 }
 0x291   : > { %v443_v58 = vpop.permute.xlu1 %442 }
 0x292   : > { %v445_v59 = vadd.f32 %v443_v58, %v438_v57 }
 0x294   : > { %v452_v61 = vadd.f32 %v450_v53, %v445_v59 }
 0x295   : > { %v457_v62 = vpop.permute.xlu1 %456 }
 0x296   : > { %v459_v63 = vadd.f32 %v457_v62, %v452_v61 }
 0x298   : > { %v466_v0 = vadd.f32 %v464_v60, %v459_v63 }
 0x299   : > { %v471_v2 = vpop.permute.xlu1 %470 }
 0x29a   : > { %v989_v3 = vpop.eup %988  ;;  %v473_v4 = vadd.f32 %v471_v2, %v466_v0 }
 0x29b   : > { %v602_v5 = vadd.f32 1.0, %v989_v3 }
 0x29c   : > { %v480_v6 = vadd.f32 %v478_v1, %v473_v4 }
 0x29d   : > { %990 = vrcp.f32 %v602_v5  ;;  %v485_v7 = vpop.permute.xlu1 %484 }
 0x29e   : > { %v487_v8 = vadd.f32 %v485_v7, %v480_v6 }
 0x2a0   : > { %v494_v10 = vadd.f32 %v492_v9, %v487_v8  ;;  %v762_v9 = vlaneseq }
 0x2a1   : > { %v499_v11 = vpop.permute.xlu1 %498 }
 0x2a2   : > { %v501_v12 = vadd.f32 %v499_v11, %v494_v10 }
 0x2a4   : > { %v503_v13 = vadd.f32 %v502_v48, %v501_v12 }
 0x2a6   : > { %v884_v33 = vmul.f32 -1.442695, %v503_v13 }
 0x2a7   : > { %v991_v14 = vpop.eup %990 }
 0x2a8   : > { %652 = vperm.xlu1 %971, %v991_v14   ;;  %612 = vperm.xlu0 %970, %v991_v14   ;;  %992 = vpow2.f32 %v884_v33 }
 0x2ac   : > { %972 = vset.pattern.permute.xlu1 %v1125_v15  ;;  %973 = vset.pattern.permute.xlu0 %v1126_v16  ;;  %v763_v15 = vshrl.u32 %v762_v9, 7 }
 0x2ad   : > { %617 = vperm.xlu1 %972, %v991_v14   ;;  %657 = vperm.xlu0 %973, %v991_v14  }
 0x2b1   : > { %974 = vset.pattern.permute.xlu1 %v1127_v17  ;;  %976 = vset.pattern.permute.xlu0 %v1128_v18 }
 0x2b2   : > { %622 = vperm.xlu1 %974, %v991_v14   ;;  %627 = vperm.xlu0 %976, %v991_v14   ;;  %v993_v19 = vpop.eup %992 }
 0x2b3   : > { %v507_v20 = vadd.f32 1.0, %v993_v19 }
 0x2b5   : > { %994 = vrcp.f32 %v507_v20 }
 0x2b6   : > { %975 = vset.pattern.permute.xlu1 %v1129_v21  ;;  %979 = vset.pattern.permute.xlu0 %v1130_v24 }
 0x2b7   : > { %662 = vperm.xlu1 %975, %v991_v14   ;;  %672 = vperm.xlu0 %979, %v991_v14  }
 0x2bb   : > { %977 = vset.pattern.permute.xlu1 %v1131_v25  ;;  %982 = vset.pattern.permute.xlu0 %v1132_v26 }
 0x2bc   : > { %667 = vperm.xlu1 %977, %v991_v14   ;;  %642 = vperm.xlu0 %982, %v991_v14  }
 0x2bf   : > { %v995_v22 = vpop.eup %994 }
 0x2c0   : > { %978 = vset.pattern.permute.xlu1 %v1133_v27  ;;  %985 = vset.pattern.permute.xlu0 %v1134_v28 }
 0x2c1   : > { %632 = vperm.xlu1 %978, %v991_v14   ;;  %647 = vperm.xlu0 %985, %v991_v14  }
 0x2c5   : > { %980 = vset.pattern.permute.xlu1 %v1135_v29  ;;  %986 = vset.pattern.permute.xlu0 %v1136_v30 }
 0x2c6   : > { %637 = vperm.xlu1 %980, %v991_v14  }
 0x2ca   : > { %981 = vset.pattern.permute.xlu1 %v1137_v31 }
 0x2cb   : > { %677 = vperm.xlu1 %981, %v991_v14  }
 0x2cf   : > { %983 = vset.pattern.permute.xlu1 %v1136_v30  ;;  %v764_v30 = vsub.s32 0, %v763_v15 }
 0x2d0   : > { %682 = vperm.xlu1 %983, %v991_v14  }
 0x2d4   : > { %984 = vset.pattern.permute.xlu1 %v1138_v32 }
 0x2d5   : > { %607 = vperm.xlu1 %984, %v991_v14  }
 0x327   : > { %v653_v23 = vpop.permute.xlu1 %652  ;;  %v613_v34 = vpop.permute.xlu0 %612 }
 0x328   : > { %v615_v35 = vmul.f32 %v995_v22, %v613_v34  ;;  %v655_v36 = vmul.f32 %v995_v22, %v653_v23 }
 0x32a   : > { %687 = vrot.lane.b32.xlu1 %v615_v35, %s1115_s14  ;;  %v996_v35 = vld [vmem:[%s1278_s8] sm:$0xff] }
 0x32c   : > { %v618_v37 = vpop.permute.xlu1 %617  ;;  %v658_v39 = vpop.permute.xlu0 %657 }
 0x32d   : > { %v620_v38 = vmul.f32 %v995_v22, %v618_v37  ;;  %v660_v40 = vmul.f32 %v995_v22, %v658_v39 }
 0x32e   : > { %715 = vrot.lane.b32.xlu1 %v655_v36, %s1115_s14  ;;  %s1589_s14 = sshll.u32 %s1272_s5, 3 }
 0x32f   : > { %691 = vrot.lane.b32.xlu0 %v620_v38, %s1113_s12  ;;  %s137_s16 = scalar_lea.vmem [#allocation7], %s1589_s14 }
 0x330   : > { %s791_s18 = sshll.u32 %s137_s16, 4  ;;  %s1526_s18 = int_to_ptr.vmem [resolvable:$true] %s791_s18 }
 0x331   : > { %v623_v41 = vpop.permute.xlu1 %622  ;;  %v628_v43 = vpop.permute.xlu0 %627  ;;  %s1037_s17 = scalar_lea.vmem %s1526_s18, 128 }
 0x332   : > { %v625_v42 = vmul.f32 %v995_v22, %v623_v41  ;;  %719 = vrot.lane.b32.xlu1 %v660_v40, %s1113_s12  ;;  %v630_v44 = vmul.f32 %v995_v22, %v628_v43  ;;  %s1587_s12 = smov 96   ;;  %p1038_p9 = scmp.ne.s32.totalorder %s1526_s18, %s1037_s17 }
 0x334   : > { %695 = vrot.lane.b32.xlu0 %v625_v42, %s1114_s13  ;;  %p1039_p1 = pnand %p1038_p9, %p1590_p0 }
 0x336   : > { %v663_v45 = vpop.permute.xlu1 %662  ;;  %v673_v49 = vpop.permute.xlu0 %672  ;;  %p1040_p2 = pneg %p1039_p1 }
 0x337   : > { %v665_v46 = vmul.f32 %v995_v22, %v663_v45  ;;  %v675_v50 = vmul.f32 %v995_v22, %v673_v49 }
 0x338   : > { %699 = vrot.lane.b32.xlu0 %v630_v44, %s1111_s10 }
 0x339   : > { %723 = vrot.lane.b32.xlu1 %v665_v46, %s1114_s13  ;;  %s1588_s13 = smov 112  }
 0x33b   : > { %v668_v47 = vpop.permute.xlu1 %667  ;;  %v643_v55 = vpop.permute.xlu0 %642 }
 0x33c   : > { %v670_v48 = vmul.f32 %v995_v22, %v668_v47  ;;  %v645_v56 = vmul.f32 %v995_v22, %v643_v55 }
 0x33e   : > { %727 = vrot.lane.b32.xlu1 %v670_v48, %s1111_s10  ;;  %s892_s10 = sshll.u32 %s1188_s0, 7  ;;  %s1139_s0 = smov [#allocation7]  }
 0x33f   : > { %s1524_s7 = scalar_lea.hbm %s1570_s2, %s892_s10  ;;  %s1041_s8 = sshll.u32 %s1139_s0, 4  ;;  %s1042_s8 = int_to_ptr.vmem [resolvable:$false] %s1041_s8 }
 0x340   : > { %v633_v51 = vpop.permute.xlu1 %632  ;;  %v648_v63 = vpop.permute.xlu0 %647  ;;  %s1043_s23 = scalar_lea.vmem %s1042_s8, 256  ;;  %p1044_p10 = scmp.lt.s32.totalorder %s1526_s18, %s1042_s8 }
 0x341   : > { %v635_v52 = vmul.f32 %v995_v22, %v633_v51  ;;  %v650_v12 = vmul.f32 %v995_v22, %v648_v63  ;;  %p1045_p13 = scmp.lt.s32.totalorder %s1043_s23, %s1037_s17 }
 0x342   : > { %731 = vrot.lane.b32.xlu1 %v675_v50, %s1586_s11 }
 0x343   : > { %703 = vrot.lane.b32.xlu0 %v635_v52, %s1586_s11  ;;  %p1046_p5 = por %p1045_p13, %p1044_p10 }
 0x345   : > { %v638_v53 = vpop.permute.xlu1 %637  ;;  %p1047_p7 = pnand %p1046_p5, %p1040_p2 }
 0x346   : > { %v640_v54 = vmul.f32 %v995_v22, %v638_v53 }
 0x348   : > { %707 = vrot.lane.b32.xlu0 %v640_v54, %s1587_s12 }
 0x34a   : > { %v678_v57 = vpop.permute.xlu1 %677 }
 0x34b   : > { %v680_v58 = vmul.f32 %v995_v22, %v678_v57 }
 0x34c   : > { %711 = vrot.lane.b32.xlu0 %v645_v56, %s1588_s13 }
 0x34d   : > { %735 = vrot.lane.b32.xlu1 %v680_v58, %s1587_s12 }
 0x34f   : > { %v683_v59 = vpop.permute.xlu1 %682 }
 0x350   : > { %v685_v60 = vmul.f32 %v995_v22, %v683_v59 }
 0x352   : > { %739 = vrot.lane.b32.xlu1 %v685_v60, %s1588_s13 }
 0x354   : > { %v608_v61 = vpop.permute.xlu1 %607 }
 0x355   : > { %v610_v10 = vmul.f32 %v995_v22, %v608_v61 }
 0x39c   : > { %v688_v62 = vpop.permute.xlu1 %687 }
 0x39d   : > { %v742_v13 = vsel %vm249_vm1, %v610_v10, %v688_v62 }
 0x3a0   : > { %v716_v0 = vpop.permute.xlu1 %715 }
 0x3a1   : > { %v692_v1 = vpop.permute.xlu0 %691  ;;  %v755_v16 = vsel %vm249_vm1, %v650_v12, %v716_v0 }
 0x3a2   : > { %v744_v14 = vsel %vm743_vm10, %v742_v13, %v692_v1 }
 0x3a4   : > { %v720_v2 = vpop.permute.xlu1 %719 }
 0x3a5   : > { %v756_v21 = vsel %vm743_vm10, %v755_v16, %v720_v2 }
 0x3a6   : > { %v696_v3 = vpop.permute.xlu0 %695 }
 0x3a7   : > { %v746_v17 = vsel %vm745_vm11, %v744_v14, %v696_v3 }
 0x3aa   : > { %v700_v5 = vpop.permute.xlu0 %699 }
 0x3ab   : > { %v724_v4 = vpop.permute.xlu1 %723  ;;  %v748_v24 = vsel %vm747_vm12, %v746_v17, %v700_v5 }
 0x3ac   : > { %v757_v26 = vsel %vm745_vm11, %v756_v21, %v724_v4 }
 0x3b0   : > { %v728_v6 = vpop.permute.xlu1 %727 }
 0x3b1   : > { %v758_v28 = vsel %vm747_vm12, %v757_v26, %v728_v6 }
 0x3b4   : > { %v732_v11 = vpop.permute.xlu1 %731 }
 0x3b5   : > { %v704_v7 = vpop.permute.xlu0 %703  ;;  %v759_v31 = vsel %vm749_vm13, %v758_v28, %v732_v11 }
 0x3b6   : > { %v750_v27 = vsel %vm749_vm13, %v748_v24, %v704_v7 }
 0x3ba   : > { %v708_v8 = vpop.permute.xlu0 %707 }
 0x3bb   : > { %v752_v29 = vsel %vm751_vm14, %v750_v27, %v708_v8 }
 0x3be   : > { %v712_v25 = vpop.permute.xlu0 %711 }
 0x3bf   : > { %v736_v18 = vpop.permute.xlu1 %735  ;;  %v754_v32 = vsel %vm753_vm15, %v752_v29, %v712_v25 }
 0x3c0   : > { %v760_v33 = vsel %vm751_vm14, %v759_v31, %v736_v18  ;;  %v765_v22 = vrot.slane %v754_v32, %v764_v30 }
 0x3c4   : > { %v740_v19 = vpop.permute.xlu1 %739 }
 0x3c5   : > { %v761_v20 = vsel %vm753_vm15, %v760_v33, %v740_v19 }
 0x3c6   : > { %v769_v23 = vrot.slane %v761_v20, %v764_v30 }
 0x3c8   : > { %v772_v34 = vcombine.low %v765_v22, %v769_v23 }
 0x3ca   : > { %v774_v36 = vmul.f32 %v996_v35, %v772_v34 }
 0x3cc   : > { %775 = vst [vmem:[%s137_s16] sm:$0xff] %v774_v36 }
 0x3cd   : > { %1050 = shalt.err (!%p1047_p7)
}
 0x3ce   : > { %s1051_s5 = scalar_lea.hbm %s1524_s7, 128  ;;  %s1055_s6 = scalar_lea.hbm %s1570_s2, 256 }
 0x3cf   : > { %p1052_p8 = scmp.ne.s32.totalorder %s1524_s7, %s1051_s5  ;;  %p1056_p3 = scmp.lt.u32.totalorder %s1524_s7, %s1570_s2 }
 0x3d0   : > { %p1057_p4 = scmp.lt.u32.totalorder %s1055_s6, %s1051_s5  ;;  %p1059_p9 = scmp.lt.u32.totalorder %s1051_s5, %s1524_s7 }
 0x3d1   : > { %p1053_p11 = pnand %p1052_p8, %p1590_p0 }
 0x3d2   : > { %p1058_p6 = por %p1057_p4, %p1056_p3 }
 0x3d3   : > { %p1054_p12 = pneg %p1053_p11 }
 0x3d4   : > { %p1060_p1 = por %p1059_p9, %p1058_p6 }
 0x3d6   : > { %p1061_p2 = pnand %p1060_p1, %p1054_p12 }
 0x3d8   : > { %1064 = shalt.err (!%p1061_p2)
}
 0x3d9   : > { %895 = dma.vmem_to_hbm [thread:$0]  (%p1590_p0), %s1526_s18, 128, %s1524_s7, %s777_s15  }
 0x3da PF: > { %s803_s11 = sand.u32 1, %s1093_s19   ;;  %p1591_p10 = scmp.ne.s32.totalorder %s1582_s3, 0 }
 0x3db   : > { %p1592_p13 = scmp.ge.s32.totalorder %s1105_s22, 2  ;;  %s804_s12 = scalar_lea.sflag [#allocation6], %s803_s11 }
 0x3dd   : > { %p902_p5 = pnand %p1592_p13, %p1591_p10 }
 0x3df   : > { %1088 = dma.done.wait (!%p902_p5), %s804_s12, 128  }
 0x3e0   : > { %1090 = vsyncadd (!%p902_p5), %s804_s12, 4294967168  ;;  %p19_p7 = scmp.ge.s32.totalorder %s1192_s24, 4   ;;  %s1593_s19 = smov %s1097_s20 }
 0x3e1   : > { %s1594_s20 = smov %s1101_s21  ;;  %s1595_s21 = smov %s1204_s27 }
 0x3e2   : > { %s1596_s22 = smov %s1192_s24  ;;  %21 = sbr.rel (!%p19_p7) target bundleno = 17 (0x11), region = 69 }
 0x3e9   :  { %809 = vsyncpa [#allocation5], 1 }
 0x3ea   :  { %811 = vsyncpa [#allocation5 + $0x1], 1 }
 0x3eb   :  { %812 = vsyncpa [#allocation6], 1 }
 0x3ec   :  { %814 = vsyncpa [#allocation6 + $0x1], 1 }

</bundles_post_ra>
